<compile_context>
chip_gen: v7x
topology: tpu7x:2x2x1
jax: 0.10.0
libtpu: 0.0.40
codegen_flags: <defaults>
</compile_context>

<pallas_src>
import jax
import jax.numpy as jnp
from jax.experimental import pallas as pl
from jax.experimental.pallas import tpu as pltpu

ACT_DTYPE = jnp.float32   # residual stream + elementwise math
MID_DTYPE = jnp.bfloat16  # bottleneck activation / im2col operand (MXU-only tensor)
DOT_DTYPE = jnp.bfloat16  # weights (f32 accumulation via preferred_element_type)

_PARALLEL = pltpu.CompilerParams(dimension_semantics=("parallel",))
_TM_CANDIDATES = (2048, 1024, 512, 256, 128)
_VMEM_BUDGET = 12 * 1024 * 1024  # stays under the default scoped-VMEM limit on v5e/v6e/v7x


# ----------------------------- Pallas kernels ------------------------------ #

def _pre_block_kernel(h_ref, s1_ref, b1_ref, w1t_ref, s2_ref, b2_ref, o_ref):
    # a2 = ReLU(BN2( W1 @ ReLU(BN1(h)) ))       tiles are [channels, lanes]
    a1 = jnp.maximum(h_ref[...] * s1_ref[...] + b1_ref[...], 0.0)
    z1 = jnp.dot(w1t_ref[...], a1.astype(w1t_ref.dtype),
                 preferred_element_type=jnp.float32)
    o_ref[...] = jnp.maximum(z1 * s2_ref[...] + b2_ref[...], 0.0).astype(o_ref.dtype)


def _post_block_proj_kernel(acat_ref, x_ref, w2t_ref, s3_ref, b3_ref, w3t_ref,
                            ssc_ref, bsc_ref, wsct_ref, o_ref):
    # o = W3 @ ReLU(BN3( W2cat @ acat )) + Wsc @ ReLU(BNsc(x))
    z2 = jnp.dot(w2t_ref[...], acat_ref[...], preferred_element_type=jnp.float32)
    a3 = jnp.maximum(z2 * s3_ref[...] + b3_ref[...], 0.0)
    out = jnp.dot(w3t_ref[...], a3.astype(w3t_ref.dtype),
                  preferred_element_type=jnp.float32)
    sc = jnp.maximum(x_ref[...] * ssc_ref[...] + bsc_ref[...], 0.0)
    out = out + jnp.dot(wsct_ref[...], sc.astype(wsct_ref.dtype),
                        preferred_element_type=jnp.float32)
    o_ref[...] = out.astype(o_ref.dtype)


def _post_block_id_kernel(acat_ref, r_ref, w2t_ref, s3_ref, b3_ref, w3t_ref, o_ref):
    # o = W3 @ ReLU(BN3( W2cat @ acat )) + r        (identity shortcut)
    z2 = jnp.dot(w2t_ref[...], acat_ref[...], preferred_element_type=jnp.float32)
    a3 = jnp.maximum(z2 * s3_ref[...] + b3_ref[...], 0.0)
    out = jnp.dot(w3t_ref[...], a3.astype(w3t_ref.dtype),
                  preferred_element_type=jnp.float32)
    o_ref[...] = (out + r_ref[...].astype(jnp.float32)).astype(o_ref.dtype)


def _maxpool_kernel(t_ref, o_ref):
    # MaxPool3d(2, stride=2): elementwise max over the leading 8-tap axis.
    x = t_ref[...]                 # (8, C, lanes)
    m = x[0]
    for k in range(1, x.shape[0]):
        m = jnp.maximum(m, x[k])
    o_ref[...] = m.astype(o_ref.dtype)


# ------------------------------ tiling helper ------------------------------- #

def _pick_tm(M, lane_bytes):
    """Largest lane-tile that (a) divides M, (b) keeps double-buffered blocks under
    the VMEM budget, and (c) prefers >= 2 grid steps so both v7x TensorCores work."""
    cap = _TM_CANDIDATES[0]
    while cap > 128 and 2 * cap * lane_bytes > _VMEM_BUDGET:
        cap //= 2
    for need_multi_step in (True, False):
        for t in _TM_CANDIDATES:
            if t > cap or M % t != 0:
                continue
            if need_multi_step and M // t < 2:
                continue
            return t
    return M  # single full-width block (legal: equals the full array dim)


# ------------------------------ pallas_call wrappers ------------------------ #

def pre_block(h, p):
    Cin, M = h.shape
    mid = p["w1t"].shape[0]
    lane_bytes = Cin * h.dtype.itemsize + mid * jnp.dtype(MID_DTYPE).itemsize
    tm = _pick_tm(M, lane_bytes)
    return pl.pallas_call(
        _pre_block_kernel,
        out_shape=jax.ShapeDtypeStruct((mid, M), MID_DTYPE),
        grid=(M // tm,),
        in_specs=[
            pl.BlockSpec((Cin, tm), lambda i: (0, i)),
            pl.BlockSpec((Cin, 1), lambda i: (0, 0)),
            pl.BlockSpec((Cin, 1), lambda i: (0, 0)),
            pl.BlockSpec((mid, Cin), lambda i: (0, 0)),
            pl.BlockSpec((mid, 1), lambda i: (0, 0)),
            pl.BlockSpec((mid, 1), lambda i: (0, 0)),
        ],
        out_specs=pl.BlockSpec((mid, tm), lambda i: (0, i)),
        compiler_params=_PARALLEL,
    )(h, p["bn1_s"], p["bn1_b"], p["w1t"], p["bn2_s"], p["bn2_b"])


def post_block(acat, h_in, p):
    Kc, M = acat.shape                    # Kc = 27 * mid
    out_c, mid = p["w3t"].shape
    if "wsct" in p:                       # projection shortcut (first block)
        Cin = h_in.shape[0]
        lane_bytes = (Kc * acat.dtype.itemsize + Cin * h_in.dtype.itemsize
                      + out_c * jnp.dtype(ACT_DTYPE).itemsize)
        tm = _pick_tm(M, lane_bytes)
        return pl.pallas_call(
            _post_block_proj_kernel,
            out_shape=jax.ShapeDtypeStruct((out_c, M), ACT_DTYPE),
            grid=(M // tm,),
            in_specs=[
                pl.BlockSpec((Kc, tm), lambda i: (0, i)),
                pl.BlockSpec((Cin, tm), lambda i: (0, i)),
                pl.BlockSpec((mid, Kc), lambda i: (0, 0)),
                pl.BlockSpec((mid, 1), lambda i: (0, 0)),
                pl.BlockSpec((mid, 1), lambda i: (0, 0)),
                pl.BlockSpec((out_c, mid), lambda i: (0, 0)),
                pl.BlockSpec((Cin, 1), lambda i: (0, 0)),
                pl.BlockSpec((Cin, 1), lambda i: (0, 0)),
                pl.BlockSpec((out_c, Cin), lambda i: (0, 0)),
            ],
            out_specs=pl.BlockSpec((out_c, tm), lambda i: (0, i)),
            compiler_params=_PARALLEL,
        )(acat, h_in, p["w2t"], p["bn3_s"], p["bn3_b"], p["w3t"],
          p["sc_s"], p["sc_b"], p["wsct"])

    # identity shortcut: h_in already has out_c channels
    lane_bytes = Kc * acat.dtype.itemsize + 2 * out_c * jnp.dtype(ACT_DTYPE).itemsize
    tm = _pick_tm(M, lane_bytes)
    return pl.pallas_call(
        _post_block_id_kernel,
        out_shape=jax.ShapeDtypeStruct((out_c, M), ACT_DTYPE),
        grid=(M // tm,),
        in_specs=[
            pl.BlockSpec((Kc, tm), lambda i: (0, i)),
            pl.BlockSpec((out_c, tm), lambda i: (0, i)),
            pl.BlockSpec((mid, Kc), lambda i: (0, 0)),
            pl.BlockSpec((mid, 1), lambda i: (0, 0)),
            pl.BlockSpec((mid, 1), lambda i: (0, 0)),
            pl.BlockSpec((out_c, mid), lambda i: (0, 0)),
        ],
        out_specs=pl.BlockSpec((out_c, tm), lambda i: (0, i)),
        compiler_params=_PARALLEL,
    )(acat, h_in, p["w2t"], p["bn3_s"], p["bn3_b"], p["w3t"])


def maxpool2(h, N, D, H, W):
    # TODO(synk): fold the 2x2x2 tap construction into the last block's kernel epilogue
    # (needs lane-decimating reshapes in-kernel); kept as wrapper glue for robustness.
    C, M = h.shape
    Dh, Hh, Wh = D // 2, H // 2, W // 2
    Mp = N * Dh * Hh * Wh
    h8 = h.reshape(C, N, Dh, 2, Hh, 2, Wh, 2)
    taps = jnp.stack(
        [h8[:, :, :, a, :, b, :, c].reshape(C, Mp)
         for a in range(2) for b in range(2) for c in range(2)],
        axis=0)                                        # (8, C, Mp)
    tm = _pick_tm(Mp, 9 * C * h.dtype.itemsize)
    return pl.pallas_call(
        _maxpool_kernel,
        out_shape=jax.ShapeDtypeStruct((C, Mp), ACT_DTYPE),
        grid=(Mp // tm,),
        in_specs=[pl.BlockSpec((8, C, tm), lambda i: (0, 0, i))],
        out_specs=pl.BlockSpec((C, tm), lambda i: (0, i)),
        compiler_params=_PARALLEL,
    )(taps)


# ------------------------------- im2col glue (plain JAX) -------------------- #

def _conv3_im2col(a2, N, D, H, W):
    """27 shifted views of the zero-padded activation concatenated along the channel
    (contraction) axis -> one (27*mid, M) operand for a single MXU matmul.
    Rows [k*mid : (k+1)*mid] belong to tap k = (kd*3 + kh)*3 + kw, matching the
    (mid, 27*mid) layout of w2t."""
    mid, M = a2.shape
    a5 = a2.reshape(mid, N, D, H, W)
    ap = jnp.pad(a5, ((0, 0), (0, 0), (1, 1), (1, 1), (1, 1)))
    taps = [ap[:, :, kd:kd + D, kh:kh + H, kw:kw + W].reshape(mid, M)
            for kd in range(3) for kh in range(3) for kw in range(3)]
    return jnp.concatenate(taps, axis=0)   # (27*mid, M)


# --------------------------- parameter initialization ----------------------- #

def _init_bn(key, c, eps=1e-5):
    k1, k2, k3, k4 = jax.random.split(key, 4)
    gamma = jax.random.uniform(k1, (c, 1), minval=0.5, maxval=1.5)
    beta = 0.1 * jax.random.normal(k2, (c, 1))
    mean = 0.1 * jax.random.normal(k3, (c, 1))
    var = jax.random.uniform(k4, (c, 1), minval=0.5, maxval=1.5)
    scale = gamma / jnp.sqrt(var + eps)
    bias = beta - mean * scale
    return scale.astype(ACT_DTYPE), bias.astype(ACT_DTYPE)


def init_fish_tail_params(key, in_c, out_c, num_blk):
    mid = out_c // 4
    blocks = []
    for bi in range(num_blk):
        cin = in_c if bi == 0 else out_c
        key, *ks = jax.random.split(key, 9)
        p = {}
        p["bn1_s"], p["bn1_b"] = _init_bn(ks[0], cin)
        p["w1t"] = (0.1 * jax.random.normal(ks[1], (mid, cin))).astype(DOT_DTYPE)
        p["bn2_s"], p["bn2_b"] = _init_bn(ks[2], mid)
        # 3x3x3 conv weight flattened to (mid_out, 27*mid_in); column k*mid_in + ci
        # corresponds to spatial tap k = (kd*3+kh)*3+kw and input channel ci.
        p["w2t"] = (0.1 * jax.random.normal(ks[3], (mid, 27 * mid))).astype(DOT_DTYPE)
        p["bn3_s"], p["bn3_b"] = _init_bn(ks[4], mid)
        p["w3t"] = (0.1 * jax.random.normal(ks[5], (out_c, mid))).astype(DOT_DTYPE)
        if cin != out_c:  # projection shortcut only on the first block
            p["sc_s"], p["sc_b"] = _init_bn(ks[6], cin)
            p["wsct"] = (0.1 * jax.random.normal(ks[7], (out_c, cin))).astype(DOT_DTYPE)
        blocks.append(p)
    return {"blocks": blocks}


# --------------------------------- forward ---------------------------------- #

def fish_tail_forward(x_ncdhw, params):
    N, C, D, H, W = x_ncdhw.shape
    M = N * D * H * W
    # NCDHW -> channels-major [C, M]: channels on sublanes, flattened spatial on lanes.
    h = jnp.transpose(x_ncdhw, (1, 0, 2, 3, 4)).reshape(C, M).astype(ACT_DTYPE)

    for p in params["blocks"]:
        a2 = pre_block(h, p)                     # BN1-ReLU-1x1 -> BN2-ReLU     (mid, M)
        acat = _conv3_im2col(a2, N, D, H, W)     # im2col                       (27*mid, M)
        h = post_block(acat, h, p)               # conv3x3x3 + BN3-ReLU-1x1 + shortcut

    out_c = h.shape[0]
    pooled = maxpool2(h, N, D, H, W)             # MaxPool3d(kernel=2, stride=2)
    out = pooled.reshape(out_c, N, D // 2, H // 2, W // 2)
    return jnp.transpose(out, (1, 0, 2, 3, 4))   # back to NCDHW


# ----------------------------------- main ------------------------------------ #

if __name__ == "__main__":
    in_c, out_c, num_blk = 4, 16, 2
    N, D, H, W = 2, 8, 8, 8

    key = jax.random.PRNGKey(0)
    kx, kp = jax.random.split(key)
    x = jax.random.normal(kx, (N, in_c, D, H, W), dtype=jnp.float32)
    params = init_fish_tail_params(kp, in_c, out_c, num_blk)

    y = jax.jit(fish_tail_forward)(x, params)
    y = jax.block_until_ready(y)
    assert y.shape == (N, out_c, D // 2, H // 2, W // 2), y.shape
    assert bool(jnp.all(jnp.isfinite(y)))
    print("KERNEL_OK")
</pallas_src>

<mosaic_0001>
module attributes {stable_mosaic.version = 11 : i64} {
  func.func @_pre_block_kernel(%arg0: i32, %arg1: memref<4x512xf32, #tpu.memory_space<vmem>>, %arg2: memref<4x1xf32, #tpu.memory_space<vmem>>, %arg3: memref<4x1xf32, #tpu.memory_space<vmem>>, %arg4: memref<4x4xbf16, #tpu.memory_space<vmem>>, %arg5: memref<4x1xf32, #tpu.memory_space<vmem>>, %arg6: memref<4x1xf32, #tpu.memory_space<vmem>>, %arg7: memref<4x512xbf16, #tpu.memory_space<vmem>>) attributes {dimension_semantics = [#tpu.dimension_semantics<parallel>], iteration_bounds = array<i64: 2>, scalar_prefetch = 0 : i64, scratch_operands = 0 : i64, tpu.core_type = #tpu.core_type<tc>, window_params = [{transform_indices = @transform_0, window_bounds = array<i64: 4, 512>}, {pipeline_mode = #tpu.pipeline_mode<synchronous>, transform_indices = @transform_1, window_bounds = array<i64: 4, 1>}, {pipeline_mode = #tpu.pipeline_mode<synchronous>, transform_indices = @transform_2, window_bounds = array<i64: 4, 1>}, {pipeline_mode = #tpu.pipeline_mode<synchronous>, transform_indices = @transform_3, window_bounds = array<i64: 4, 4>}, {pipeline_mode = #tpu.pipeline_mode<synchronous>, transform_indices = @transform_4, window_bounds = array<i64: 4, 1>}, {pipeline_mode = #tpu.pipeline_mode<synchronous>, transform_indices = @transform_5, window_bounds = array<i64: 4, 1>}, {transform_indices = @transform_6, window_bounds = array<i64: 4, 512>}]} {
    %c0 = arith.constant 0 : index
    %c0_0 = arith.constant 0 : index
    %0 = vector.load %arg1[%c0, %c0_0] : memref<4x512xf32, #tpu.memory_space<vmem>>, vector<4x512xf32>
    %c0_1 = arith.constant 0 : index
    %c0_2 = arith.constant 0 : index
    %1 = vector.load %arg2[%c0_1, %c0_2] : memref<4x1xf32, #tpu.memory_space<vmem>>, vector<4x1xf32>
    %2 = vector.broadcast %1 : vector<4x1xf32> to vector<4x512xf32>
    %3 = arith.mulf %0, %2 : vector<4x512xf32>
    %c0_3 = arith.constant 0 : index
    %c0_4 = arith.constant 0 : index
    %4 = vector.load %arg3[%c0_3, %c0_4] : memref<4x1xf32, #tpu.memory_space<vmem>>, vector<4x1xf32>
    %5 = vector.broadcast %4 : vector<4x1xf32> to vector<4x512xf32>
    %6 = arith.addf %3, %5 : vector<4x512xf32>
    %cst = arith.constant 0.000000e+00 : f32
    %7 = vector.broadcast %cst : f32 to vector<4x512xf32>
    %8 = arith.maximumf %6, %7 : vector<4x512xf32>
    %c0_5 = arith.constant 0 : index
    %c0_6 = arith.constant 0 : index
    %9 = vector.load %arg4[%c0_5, %c0_6] : memref<4x4xbf16, #tpu.memory_space<vmem>>, vector<4x4xbf16>
    %10 = arith.truncf %8 : vector<4x512xf32> to vector<4x512xbf16>
    %cst_7 = arith.constant dense<0.000000e+00> : vector<4x512xf32>
    %11 = tpu.matmul %9, %10, %cst_7 {dimension_numbers = #tpu.dot_dimension_numbers<[1], [0], [0], [1], [0, 0, 1, 1], [], []>} : vector<4x4xbf16>, vector<4x512xbf16>, vector<4x512xf32> -> vector<4x512xf32>
    %c0_8 = arith.constant 0 : index
    %c0_9 = arith.constant 0 : index
    %12 = vector.load %arg5[%c0_8, %c0_9] : memref<4x1xf32, #tpu.memory_space<vmem>>, vector<4x1xf32>
    %13 = vector.broadcast %12 : vector<4x1xf32> to vector<4x512xf32>
    %14 = arith.mulf %11, %13 : vector<4x512xf32>
    %c0_10 = arith.constant 0 : index
    %c0_11 = arith.constant 0 : index
    %15 = vector.load %arg6[%c0_10, %c0_11] : memref<4x1xf32, #tpu.memory_space<vmem>>, vector<4x1xf32>
    %16 = vector.broadcast %15 : vector<4x1xf32> to vector<4x512xf32>
    %17 = arith.addf %14, %16 : vector<4x512xf32>
    %cst_12 = arith.constant 0.000000e+00 : f32
    %18 = vector.broadcast %cst_12 : f32 to vector<4x512xf32>
    %19 = arith.maximumf %17, %18 : vector<4x512xf32>
    %20 = arith.truncf %19 : vector<4x512xf32> to vector<4x512xbf16>
    %c0_13 = arith.constant 0 : index
    %c0_14 = arith.constant 0 : index
    %21 = vector.load %arg7[%c0_13, %c0_14] : memref<4x512xbf16, #tpu.memory_space<vmem>>, vector<4x512xbf16>
    tpu.vector_store %arg7[%c0_13, %c0_14], %20 {strides = array<i32>} : memref<4x512xbf16, #tpu.memory_space<vmem>>, vector<4x512xbf16>,
    return
  }
  func.func @transform_0(%arg0: i32) -> (i32, i32) {
    %c0_i32 = arith.constant 0 : i32
    %c0_i32_0 = arith.constant 0 : i32
    return %c0_i32, %arg0 : i32, i32
  }
  func.func @transform_1(%arg0: i32) -> (i32, i32) {
    %c0_i32 = arith.constant 0 : i32
    %c0_i32_0 = arith.constant 0 : i32
    %c0_i32_1 = arith.constant 0 : i32
    return %c0_i32, %c0_i32_0 : i32, i32
  }
  func.func @transform_2(%arg0: i32) -> (i32, i32) {
    %c0_i32 = arith.constant 0 : i32
    %c0_i32_0 = arith.constant 0 : i32
    %c0_i32_1 = arith.constant 0 : i32
    return %c0_i32, %c0_i32_0 : i32, i32
  }
  func.func @transform_3(%arg0: i32) -> (i32, i32) {
    %c0_i32 = arith.constant 0 : i32
    %c0_i32_0 = arith.constant 0 : i32
    %c0_i32_1 = arith.constant 0 : i32
    return %c0_i32, %c0_i32_0 : i32, i32
  }
  func.func @transform_4(%arg0: i32) -> (i32, i32) {
    %c0_i32 = arith.constant 0 : i32
    %c0_i32_0 = arith.constant 0 : i32
    %c0_i32_1 = arith.constant 0 : i32
    return %c0_i32, %c0_i32_0 : i32, i32
  }
  func.func @transform_5(%arg0: i32) -> (i32, i32) {
    %c0_i32 = arith.constant 0 : i32
    %c0_i32_0 = arith.constant 0 : i32
    %c0_i32_1 = arith.constant 0 : i32
    return %c0_i32, %c0_i32_0 : i32, i32
  }
  func.func @transform_6(%arg0: i32) -> (i32, i32) {
    %c0_i32 = arith.constant 0 : i32
    %c0_i32_0 = arith.constant 0 : i32
    return %c0_i32, %arg0 : i32, i32
  }
}

module attributes {stable_mosaic.version = 11 : i64} {
  func.func @_post_block_proj_kernel(%arg0: i32, %arg1: memref<108x512xbf16, #tpu.memory_space<vmem>>, %arg2: memref<4x512xf32, #tpu.memory_space<vmem>>, %arg3: memref<4x108xbf16, #tpu.memory_space<vmem>>, %arg4: memref<4x1xf32, #tpu.memory_space<vmem>>, %arg5: memref<4x1xf32, #tpu.memory_space<vmem>>, %arg6: memref<16x4xbf16, #tpu.memory_space<vmem>>, %arg7: memref<4x1xf32, #tpu.memory_space<vmem>>, %arg8: memref<4x1xf32, #tpu.memory_space<vmem>>, %arg9: memref<16x4xbf16, #tpu.memory_space<vmem>>, %arg10: memref<16x512xf32, #tpu.memory_space<vmem>>) attributes {dimension_semantics = [#tpu.dimension_semantics<parallel>], iteration_bounds = array<i64: 2>, scalar_prefetch = 0 : i64, scratch_operands = 0 : i64, tpu.core_type = #tpu.core_type<tc>, window_params = [{transform_indices = @transform_0, window_bounds = array<i64: 108, 512>}, {transform_indices = @transform_1, window_bounds = array<i64: 4, 512>}, {pipeline_mode = #tpu.pipeline_mode<synchronous>, transform_indices = @transform_2, window_bounds = array<i64: 4, 108>}, {pipeline_mode = #tpu.pipeline_mode<synchronous>, transform_indices = @transform_3, window_bounds = array<i64: 4, 1>}, {pipeline_mode = #tpu.pipeline_mode<synchronous>, transform_indices = @transform_4, window_bounds = array<i64: 4, 1>}, {pipeline_mode = #tpu.pipeline_mode<synchronous>, transform_indices = @transform_5, window_bounds = array<i64: 16, 4>}, {pipeline_mode = #tpu.pipeline_mode<synchronous>, transform_indices = @transform_6, window_bounds = array<i64: 4, 1>}, {pipeline_mode = #tpu.pipeline_mode<synchronous>, transform_indices = @transform_7, window_bounds = array<i64: 4, 1>}, {pipeline_mode = #tpu.pipeline_mode<synchronous>, transform_indices = @transform_8, window_bounds = array<i64: 16, 4>}, {transform_indices = @transform_9, window_bounds = array<i64: 16, 512>}]} {
    %c0 = arith.constant 0 : index
    %c0_0 = arith.constant 0 : index
    %0 = vector.load %arg3[%c0, %c0_0] : memref<4x108xbf16, #tpu.memory_space<vmem>>, vector<4x108xbf16>
    %c0_1 = arith.constant 0 : index
    %c0_2 = arith.constant 0 : index
    %1 = vector.load %arg1[%c0_1, %c0_2] : memref<108x512xbf16, #tpu.memory_space<vmem>>, vector<108x512xbf16>
    %cst = arith.constant dense<0.000000e+00> : vector<4x512xf32>
    %2 = tpu.matmul %0, %1, %cst {dimension_numbers = #tpu.dot_dimension_numbers<[1], [0], [0], [1], [0, 0, 1, 1], [], []>} : vector<4x108xbf16>, vector<108x512xbf16>, vector<4x512xf32> -> vector<4x512xf32>
    %c0_3 = arith.constant 0 : index
    %c0_4 = arith.constant 0 : index
    %3 = vector.load %arg4[%c0_3, %c0_4] : memref<4x1xf32, #tpu.memory_space<vmem>>, vector<4x1xf32>
    %4 = vector.broadcast %3 : vector<4x1xf32> to vector<4x512xf32>
    %5 = arith.mulf %2, %4 : vector<4x512xf32>
    %c0_5 = arith.constant 0 : index
    %c0_6 = arith.constant 0 : index
    %6 = vector.load %arg5[%c0_5, %c0_6] : memref<4x1xf32, #tpu.memory_space<vmem>>, vector<4x1xf32>
    %7 = vector.broadcast %6 : vector<4x1xf32> to vector<4x512xf32>
    %8 = arith.addf %5, %7 : vector<4x512xf32>
    %cst_7 = arith.constant 0.000000e+00 : f32
    %9 = vector.broadcast %cst_7 : f32 to vector<4x512xf32>
    %10 = arith.maximumf %8, %9 : vector<4x512xf32>
    %c0_8 = arith.constant 0 : index
    %c0_9 = arith.constant 0 : index
    %11 = vector.load %arg6[%c0_8, %c0_9] : memref<16x4xbf16, #tpu.memory_space<vmem>>, vector<16x4xbf16>
    %12 = arith.truncf %10 : vector<4x512xf32> to vector<4x512xbf16>
    %cst_10 = arith.constant dense<0.000000e+00> : vector<16x512xf32>
    %13 = tpu.matmul %11, %12, %cst_10 {dimension_numbers = #tpu.dot_dimension_numbers<[1], [0], [0], [1], [0, 0, 1, 1], [], []>} : vector<16x4xbf16>, vector<4x512xbf16>, vector<16x512xf32> -> vector<16x512xf32>
    %c0_11 = arith.constant 0 : index
    %c0_12 = arith.constant 0 : index
    %14 = vector.load %arg2[%c0_11, %c0_12] : memref<4x512xf32, #tpu.memory_space<vmem>>, vector<4x512xf32>
    %c0_13 = arith.constant 0 : index
    %c0_14 = arith.constant 0 : index
    %15 = vector.load %arg7[%c0_13, %c0_14] : memref<4x1xf32, #tpu.memory_space<vmem>>, vector<4x1xf32>
    %16 = vector.broadcast %15 : vector<4x1xf32> to vector<4x512xf32>
    %17 = arith.mulf %14, %16 : vector<4x512xf32>
    %c0_15 = arith.constant 0 : index
    %c0_16 = arith.constant 0 : index
    %18 = vector.load %arg8[%c0_15, %c0_16] : memref<4x1xf32, #tpu.memory_space<vmem>>, vector<4x1xf32>
    %19 = vector.broadcast %18 : vector<4x1xf32> to vector<4x512xf32>
    %20 = arith.addf %17, %19 : vector<4x512xf32>
    %cst_17 = arith.constant 0.000000e+00 : f32
    %21 = vector.broadcast %cst_17 : f32 to vector<4x512xf32>
    %22 = arith.maximumf %20, %21 : vector<4x512xf32>
    %c0_18 = arith.constant 0 : index
    %c0_19 = arith.constant 0 : index
    %23 = vector.load %arg9[%c0_18, %c0_19] : memref<16x4xbf16, #tpu.memory_space<vmem>>, vector<16x4xbf16>
    %24 = arith.truncf %22 : vector<4x512xf32> to vector<4x512xbf16>
    %cst_20 = arith.constant dense<0.000000e+00> : vector<16x512xf32>
    %25 = tpu.matmul %23, %24, %cst_20 {dimension_numbers = #tpu.dot_dimension_numbers<[1], [0], [0], [1], [0, 0, 1, 1], [], []>} : vector<16x4xbf16>, vector<4x512xbf16>, vector<16x512xf32> -> vector<16x512xf32>
    %26 = arith.addf %13, %25 : vector<16x512xf32>
    %c0_21 = arith.constant 0 : index
    %c0_22 = arith.constant 0 : index
    %27 = vector.load %arg10[%c0_21, %c0_22] : memref<16x512xf32, #tpu.memory_space<vmem>>, vector<16x512xf32>
    tpu.vector_store %arg10[%c0_21, %c0_22], %26 {strides = array<i32>} : memref<16x512xf32, #tpu.memory_space<vmem>>, vector<16x512xf32>,
    return
  }
  func.func @transform_0(%arg0: i32) -> (i32, i32) {
    %c0_i32 = arith.constant 0 : i32
    %c0_i32_0 = arith.constant 0 : i32
    return %c0_i32, %arg0 : i32, i32
  }
  func.func @transform_1(%arg0: i32) -> (i32, i32) {
    %c0_i32 = arith.constant 0 : i32
    %c0_i32_0 = arith.constant 0 : i32
    return %c0_i32, %arg0 : i32, i32
  }
  func.func @transform_2(%arg0: i32) -> (i32, i32) {
    %c0_i32 = arith.constant 0 : i32
    %c0_i32_0 = arith.constant 0 : i32
    %c0_i32_1 = arith.constant 0 : i32
    return %c0_i32, %c0_i32_0 : i32, i32
  }
  func.func @transform_3(%arg0: i32) -> (i32, i32) {
    %c0_i32 = arith.constant 0 : i32
    %c0_i32_0 = arith.constant 0 : i32
    %c0_i32_1 = arith.constant 0 : i32
    return %c0_i32, %c0_i32_0 : i32, i32
  }
  func.func @transform_4(%arg0: i32) -> (i32, i32) {
    %c0_i32 = arith.constant 0 : i32
    %c0_i32_0 = arith.constant 0 : i32
    %c0_i32_1 = arith.constant 0 : i32
    return %c0_i32, %c0_i32_0 : i32, i32
  }
  func.func @transform_5(%arg0: i32) -> (i32, i32) {
    %c0_i32 = arith.constant 0 : i32
    %c0_i32_0 = arith.constant 0 : i32
    %c0_i32_1 = arith.constant 0 : i32
    return %c0_i32, %c0_i32_0 : i32, i32
  }
  func.func @transform_6(%arg0: i32) -> (i32, i32) {
    %c0_i32 = arith.constant 0 : i32
    %c0_i32_0 = arith.constant 0 : i32
    %c0_i32_1 = arith.constant 0 : i32
    return %c0_i32, %c0_i32_0 : i32, i32
  }
  func.func @transform_7(%arg0: i32) -> (i32, i32) {
    %c0_i32 = arith.constant 0 : i32
    %c0_i32_0 = arith.constant 0 : i32
    %c0_i32_1 = arith.constant 0 : i32
    return %c0_i32, %c0_i32_0 : i32, i32
  }
  func.func @transform_8(%arg0: i32) -> (i32, i32) {
    %c0_i32 = arith.constant 0 : i32
    %c0_i32_0 = arith.constant 0 : i32
    %c0_i32_1 = arith.constant 0 : i32
    return %c0_i32, %c0_i32_0 : i32, i32
  }
  func.func @transform_9(%arg0: i32) -> (i32, i32) {
    %c0_i32 = arith.constant 0 : i32
    %c0_i32_0 = arith.constant 0 : i32
    return %c0_i32, %arg0 : i32, i32
  }
}

module attributes {stable_mosaic.version = 11 : i64} {
  func.func @_pre_block_kernel(%arg0: i32, %arg1: memref<16x512xf32, #tpu.memory_space<vmem>>, %arg2: memref<16x1xf32, #tpu.memory_space<vmem>>, %arg3: memref<16x1xf32, #tpu.memory_space<vmem>>, %arg4: memref<4x16xbf16, #tpu.memory_space<vmem>>, %arg5: memref<4x1xf32, #tpu.memory_space<vmem>>, %arg6: memref<4x1xf32, #tpu.memory_space<vmem>>, %arg7: memref<4x512xbf16, #tpu.memory_space<vmem>>) attributes {dimension_semantics = [#tpu.dimension_semantics<parallel>], iteration_bounds = array<i64: 2>, scalar_prefetch = 0 : i64, scratch_operands = 0 : i64, tpu.core_type = #tpu.core_type<tc>, window_params = [{transform_indices = @transform_0, window_bounds = array<i64: 16, 512>}, {pipeline_mode = #tpu.pipeline_mode<synchronous>, transform_indices = @transform_1, window_bounds = array<i64: 16, 1>}, {pipeline_mode = #tpu.pipeline_mode<synchronous>, transform_indices = @transform_2, window_bounds = array<i64: 16, 1>}, {pipeline_mode = #tpu.pipeline_mode<synchronous>, transform_indices = @transform_3, window_bounds = array<i64: 4, 16>}, {pipeline_mode = #tpu.pipeline_mode<synchronous>, transform_indices = @transform_4, window_bounds = array<i64: 4, 1>}, {pipeline_mode = #tpu.pipeline_mode<synchronous>, transform_indices = @transform_5, window_bounds = array<i64: 4, 1>}, {transform_indices = @transform_6, window_bounds = array<i64: 4, 512>}]} {
    %c0 = arith.constant 0 : index
    %c0_0 = arith.constant 0 : index
    %0 = vector.load %arg1[%c0, %c0_0] : memref<16x512xf32, #tpu.memory_space<vmem>>, vector<16x512xf32>
    %c0_1 = arith.constant 0 : index
    %c0_2 = arith.constant 0 : index
    %1 = vector.load %arg2[%c0_1, %c0_2] : memref<16x1xf32, #tpu.memory_space<vmem>>, vector<16x1xf32>
    %2 = vector.broadcast %1 : vector<16x1xf32> to vector<16x512xf32>
    %3 = arith.mulf %0, %2 : vector<16x512xf32>
    %c0_3 = arith.constant 0 : index
    %c0_4 = arith.constant 0 : index
    %4 = vector.load %arg3[%c0_3, %c0_4] : memref<16x1xf32, #tpu.memory_space<vmem>>, vector<16x1xf32>
    %5 = vector.broadcast %4 : vector<16x1xf32> to vector<16x512xf32>
    %6 = arith.addf %3, %5 : vector<16x512xf32>
    %cst = arith.constant 0.000000e+00 : f32
    %7 = vector.broadcast %cst : f32 to vector<16x512xf32>
    %8 = arith.maximumf %6, %7 : vector<16x512xf32>
    %c0_5 = arith.constant 0 : index
    %c0_6 = arith.constant 0 : index
    %9 = vector.load %arg4[%c0_5, %c0_6] : memref<4x16xbf16, #tpu.memory_space<vmem>>, vector<4x16xbf16>
    %10 = arith.truncf %8 : vector<16x512xf32> to vector<16x512xbf16>
    %cst_7 = arith.constant dense<0.000000e+00> : vector<4x512xf32>
    %11 = tpu.matmul %9, %10, %cst_7 {dimension_numbers = #tpu.dot_dimension_numbers<[1], [0], [0], [1], [0, 0, 1, 1], [], []>} : vector<4x16xbf16>, vector<16x512xbf16>, vector<4x512xf32> -> vector<4x512xf32>
    %c0_8 = arith.constant 0 : index
    %c0_9 = arith.constant 0 : index
    %12 = vector.load %arg5[%c0_8, %c0_9] : memref<4x1xf32, #tpu.memory_space<vmem>>, vector<4x1xf32>
    %13 = vector.broadcast %12 : vector<4x1xf32> to vector<4x512xf32>
    %14 = arith.mulf %11, %13 : vector<4x512xf32>
    %c0_10 = arith.constant 0 : index
    %c0_11 = arith.constant 0 : index
    %15 = vector.load %arg6[%c0_10, %c0_11] : memref<4x1xf32, #tpu.memory_space<vmem>>, vector<4x1xf32>
    %16 = vector.broadcast %15 : vector<4x1xf32> to vector<4x512xf32>
    %17 = arith.addf %14, %16 : vector<4x512xf32>
    %cst_12 = arith.constant 0.000000e+00 : f32
    %18 = vector.broadcast %cst_12 : f32 to vector<4x512xf32>
    %19 = arith.maximumf %17, %18 : vector<4x512xf32>
    %20 = arith.truncf %19 : vector<4x512xf32> to vector<4x512xbf16>
    %c0_13 = arith.constant 0 : index
    %c0_14 = arith.constant 0 : index
    %21 = vector.load %arg7[%c0_13, %c0_14] : memref<4x512xbf16, #tpu.memory_space<vmem>>, vector<4x512xbf16>
    tpu.vector_store %arg7[%c0_13, %c0_14], %20 {strides = array<i32>} : memref<4x512xbf16, #tpu.memory_space<vmem>>, vector<4x512xbf16>,
    return
  }
  func.func @transform_0(%arg0: i32) -> (i32, i32) {
    %c0_i32 = arith.constant 0 : i32
    %c0_i32_0 = arith.constant 0 : i32
    return %c0_i32, %arg0 : i32, i32
  }
  func.func @transform_1(%arg0: i32) -> (i32, i32) {
    %c0_i32 = arith.constant 0 : i32
    %c0_i32_0 = arith.constant 0 : i32
    %c0_i32_1 = arith.constant 0 : i32
    return %c0_i32, %c0_i32_0 : i32, i32
  }
  func.func @transform_2(%arg0: i32) -> (i32, i32) {
    %c0_i32 = arith.constant 0 : i32
    %c0_i32_0 = arith.constant 0 : i32
    %c0_i32_1 = arith.constant 0 : i32
    return %c0_i32, %c0_i32_0 : i32, i32
  }
  func.func @transform_3(%arg0: i32) -> (i32, i32) {
    %c0_i32 = arith.constant 0 : i32
    %c0_i32_0 = arith.constant 0 : i32
    %c0_i32_1 = arith.constant 0 : i32
    return %c0_i32, %c0_i32_0 : i32, i32
  }
  func.func @transform_4(%arg0: i32) -> (i32, i32) {
    %c0_i32 = arith.constant 0 : i32
    %c0_i32_0 = arith.constant 0 : i32
    %c0_i32_1 = arith.constant 0 : i32
    return %c0_i32, %c0_i32_0 : i32, i32
  }
  func.func @transform_5(%arg0: i32) -> (i32, i32) {
    %c0_i32 = arith.constant 0 : i32
    %c0_i32_0 = arith.constant 0 : i32
    %c0_i32_1 = arith.constant 0 : i32
    return %c0_i32, %c0_i32_0 : i32, i32
  }
  func.func @transform_6(%arg0: i32) -> (i32, i32) {
    %c0_i32 = arith.constant 0 : i32
    %c0_i32_0 = arith.constant 0 : i32
    return %c0_i32, %arg0 : i32, i32
  }
}

module attributes {stable_mosaic.version = 11 : i64} {
  func.func @_post_block_id_kernel(%arg0: i32, %arg1: memref<108x512xbf16, #tpu.memory_space<vmem>>, %arg2: memref<16x512xf32, #tpu.memory_space<vmem>>, %arg3: memref<4x108xbf16, #tpu.memory_space<vmem>>, %arg4: memref<4x1xf32, #tpu.memory_space<vmem>>, %arg5: memref<4x1xf32, #tpu.memory_space<vmem>>, %arg6: memref<16x4xbf16, #tpu.memory_space<vmem>>, %arg7: memref<16x512xf32, #tpu.memory_space<vmem>>) attributes {dimension_semantics = [#tpu.dimension_semantics<parallel>], iteration_bounds = array<i64: 2>, scalar_prefetch = 0 : i64, scratch_operands = 0 : i64, tpu.core_type = #tpu.core_type<tc>, window_params = [{transform_indices = @transform_0, window_bounds = array<i64: 108, 512>}, {transform_indices = @transform_1, window_bounds = array<i64: 16, 512>}, {pipeline_mode = #tpu.pipeline_mode<synchronous>, transform_indices = @transform_2, window_bounds = array<i64: 4, 108>}, {pipeline_mode = #tpu.pipeline_mode<synchronous>, transform_indices = @transform_3, window_bounds = array<i64: 4, 1>}, {pipeline_mode = #tpu.pipeline_mode<synchronous>, transform_indices = @transform_4, window_bounds = array<i64: 4, 1>}, {pipeline_mode = #tpu.pipeline_mode<synchronous>, transform_indices = @transform_5, window_bounds = array<i64: 16, 4>}, {transform_indices = @transform_6, window_bounds = array<i64: 16, 512>}]} {
    %c0 = arith.constant 0 : index
    %c0_0 = arith.constant 0 : index
    %0 = vector.load %arg3[%c0, %c0_0] : memref<4x108xbf16, #tpu.memory_space<vmem>>, vector<4x108xbf16>
    %c0_1 = arith.constant 0 : index
    %c0_2 = arith.constant 0 : index
    %1 = vector.load %arg1[%c0_1, %c0_2] : memref<108x512xbf16, #tpu.memory_space<vmem>>, vector<108x512xbf16>
    %cst = arith.constant dense<0.000000e+00> : vector<4x512xf32>
    %2 = tpu.matmul %0, %1, %cst {dimension_numbers = #tpu.dot_dimension_numbers<[1], [0], [0], [1], [0, 0, 1, 1], [], []>} : vector<4x108xbf16>, vector<108x512xbf16>, vector<4x512xf32> -> vector<4x512xf32>
    %c0_3 = arith.constant 0 : index
    %c0_4 = arith.constant 0 : index
    %3 = vector.load %arg4[%c0_3, %c0_4] : memref<4x1xf32, #tpu.memory_space<vmem>>, vector<4x1xf32>
    %4 = vector.broadcast %3 : vector<4x1xf32> to vector<4x512xf32>
    %5 = arith.mulf %2, %4 : vector<4x512xf32>
    %c0_5 = arith.constant 0 : index
    %c0_6 = arith.constant 0 : index
    %6 = vector.load %arg5[%c0_5, %c0_6] : memref<4x1xf32, #tpu.memory_space<vmem>>, vector<4x1xf32>
    %7 = vector.broadcast %6 : vector<4x1xf32> to vector<4x512xf32>
    %8 = arith.addf %5, %7 : vector<4x512xf32>
    %cst_7 = arith.constant 0.000000e+00 : f32
    %9 = vector.broadcast %cst_7 : f32 to vector<4x512xf32>
    %10 = arith.maximumf %8, %9 : vector<4x512xf32>
    %c0_8 = arith.constant 0 : index
    %c0_9 = arith.constant 0 : index
    %11 = vector.load %arg6[%c0_8, %c0_9] : memref<16x4xbf16, #tpu.memory_space<vmem>>, vector<16x4xbf16>
    %12 = arith.truncf %10 : vector<4x512xf32> to vector<4x512xbf16>
    %cst_10 = arith.constant dense<0.000000e+00> : vector<16x512xf32>
    %13 = tpu.matmul %11, %12, %cst_10 {dimension_numbers = #tpu.dot_dimension_numbers<[1], [0], [0], [1], [0, 0, 1, 1], [], []>} : vector<16x4xbf16>, vector<4x512xbf16>, vector<16x512xf32> -> vector<16x512xf32>
    %c0_11 = arith.constant 0 : index
    %c0_12 = arith.constant 0 : index
    %14 = vector.load %arg2[%c0_11, %c0_12] : memref<16x512xf32, #tpu.memory_space<vmem>>, vector<16x512xf32>
    %15 = arith.addf %13, %14 : vector<16x512xf32>
    %c0_13 = arith.constant 0 : index
    %c0_14 = arith.constant 0 : index
    %16 = vector.load %arg7[%c0_13, %c0_14] : memref<16x512xf32, #tpu.memory_space<vmem>>, vector<16x512xf32>
    tpu.vector_store %arg7[%c0_13, %c0_14], %15 {strides = array<i32>} : memref<16x512xf32, #tpu.memory_space<vmem>>, vector<16x512xf32>,
    return
  }
  func.func @transform_0(%arg0: i32) -> (i32, i32) {
    %c0_i32 = arith.constant 0 : i32
    %c0_i32_0 = arith.constant 0 : i32
    return %c0_i32, %arg0 : i32, i32
  }
  func.func @transform_1(%arg0: i32) -> (i32, i32) {
    %c0_i32 = arith.constant 0 : i32
    %c0_i32_0 = arith.constant 0 : i32
    return %c0_i32, %arg0 : i32, i32
  }
  func.func @transform_2(%arg0: i32) -> (i32, i32) {
    %c0_i32 = arith.constant 0 : i32
    %c0_i32_0 = arith.constant 0 : i32
    %c0_i32_1 = arith.constant 0 : i32
    return %c0_i32, %c0_i32_0 : i32, i32
  }
  func.func @transform_3(%arg0: i32) -> (i32, i32) {
    %c0_i32 = arith.constant 0 : i32
    %c0_i32_0 = arith.constant 0 : i32
    %c0_i32_1 = arith.constant 0 : i32
    return %c0_i32, %c0_i32_0 : i32, i32
  }
  func.func @transform_4(%arg0: i32) -> (i32, i32) {
    %c0_i32 = arith.constant 0 : i32
    %c0_i32_0 = arith.constant 0 : i32
    %c0_i32_1 = arith.constant 0 : i32
    return %c0_i32, %c0_i32_0 : i32, i32
  }
  func.func @transform_5(%arg0: i32) -> (i32, i32) {
    %c0_i32 = arith.constant 0 : i32
    %c0_i32_0 = arith.constant 0 : i32
    %c0_i32_1 = arith.constant 0 : i32
    return %c0_i32, %c0_i32_0 : i32, i32
  }
  func.func @transform_6(%arg0: i32) -> (i32, i32) {
    %c0_i32 = arith.constant 0 : i32
    %c0_i32_0 = arith.constant 0 : i32
    return %c0_i32, %arg0 : i32, i32
  }
}

module attributes {stable_mosaic.version = 11 : i64} {
  func.func @_maxpool_kernel(%arg0: i32, %arg1: memref<8x16x128xf32, #tpu.memory_space<vmem>>, %arg2: memref<16x128xf32, #tpu.memory_space<vmem>>) attributes {dimension_semantics = [#tpu.dimension_semantics<parallel>], iteration_bounds = array<i64: 1>, scalar_prefetch = 0 : i64, scratch_operands = 0 : i64, tpu.core_type = #tpu.core_type<tc>, window_params = [{transform_indices = @transform_0, window_bounds = array<i64: 8, 16, 128>}, {transform_indices = @transform_1, window_bounds = array<i64: 16, 128>}]} {
    %c0 = arith.constant 0 : index
    %c0_0 = arith.constant 0 : index
    %c0_1 = arith.constant 0 : index
    %0 = vector.load %arg1[%c0, %c0_0, %c0_1] : memref<8x16x128xf32, #tpu.memory_space<vmem>>, vector<8x16x128xf32>
    %1 = vector.extract_strided_slice %0 {offsets = [0, 0, 0], sizes = [1, 16, 128], strides = [1, 1, 1]} : vector<8x16x128xf32> to vector<1x16x128xf32>
    %2 = vector.shape_cast %1 : vector<1x16x128xf32> to vector<16x128xf32>
    %3 = vector.extract_strided_slice %0 {offsets = [1, 0, 0], sizes = [1, 16, 128], strides = [1, 1, 1]} : vector<8x16x128xf32> to vector<1x16x128xf32>
    %4 = vector.shape_cast %3 : vector<1x16x128xf32> to vector<16x128xf32>
    %5 = arith.maximumf %2, %4 : vector<16x128xf32>
    %6 = vector.extract_strided_slice %0 {offsets = [2, 0, 0], sizes = [1, 16, 128], strides = [1, 1, 1]} : vector<8x16x128xf32> to vector<1x16x128xf32>
    %7 = vector.shape_cast %6 : vector<1x16x128xf32> to vector<16x128xf32>
    %8 = arith.maximumf %5, %7 : vector<16x128xf32>
    %9 = vector.extract_strided_slice %0 {offsets = [3, 0, 0], sizes = [1, 16, 128], strides = [1, 1, 1]} : vector<8x16x128xf32> to vector<1x16x128xf32>
    %10 = vector.shape_cast %9 : vector<1x16x128xf32> to vector<16x128xf32>
    %11 = arith.maximumf %8, %10 : vector<16x128xf32>
    %12 = vector.extract_strided_slice %0 {offsets = [4, 0, 0], sizes = [1, 16, 128], strides = [1, 1, 1]} : vector<8x16x128xf32> to vector<1x16x128xf32>
    %13 = vector.shape_cast %12 : vector<1x16x128xf32> to vector<16x128xf32>
    %14 = arith.maximumf %11, %13 : vector<16x128xf32>
    %15 = vector.extract_strided_slice %0 {offsets = [5, 0, 0], sizes = [1, 16, 128], strides = [1, 1, 1]} : vector<8x16x128xf32> to vector<1x16x128xf32>
    %16 = vector.shape_cast %15 : vector<1x16x128xf32> to vector<16x128xf32>
    %17 = arith.maximumf %14, %16 : vector<16x128xf32>
    %18 = vector.extract_strided_slice %0 {offsets = [6, 0, 0], sizes = [1, 16, 128], strides = [1, 1, 1]} : vector<8x16x128xf32> to vector<1x16x128xf32>
    %19 = vector.shape_cast %18 : vector<1x16x128xf32> to vector<16x128xf32>
    %20 = arith.maximumf %17, %19 : vector<16x128xf32>
    %21 = vector.extract_strided_slice %0 {offsets = [7, 0, 0], sizes = [1, 16, 128], strides = [1, 1, 1]} : vector<8x16x128xf32> to vector<1x16x128xf32>
    %22 = vector.shape_cast %21 : vector<1x16x128xf32> to vector<16x128xf32>
    %23 = arith.maximumf %20, %22 : vector<16x128xf32>
    %c0_2 = arith.constant 0 : index
    %c0_3 = arith.constant 0 : index
    %24 = vector.load %arg2[%c0_2, %c0_3] : memref<16x128xf32, #tpu.memory_space<vmem>>, vector<16x128xf32>
    tpu.vector_store %arg2[%c0_2, %c0_3], %23 {strides = array<i32>} : memref<16x128xf32, #tpu.memory_space<vmem>>, vector<16x128xf32>,
    return
  }
  func.func @transform_0(%arg0: i32) -> (i32, i32, i32) {
    %c0_i32 = arith.constant 0 : i32
    %c0_i32_0 = arith.constant 0 : i32
    %c0_i32_1 = arith.constant 0 : i32
    return %c0_i32, %c0_i32_0, %arg0 : i32, i32, i32
  }
  func.func @transform_1(%arg0: i32) -> (i32, i32) {
    %c0_i32 = arith.constant 0 : i32
    %c0_i32_0 = arith.constant 0 : i32
    return %c0_i32, %arg0 : i32, i32
  }
}

</mosaic_0001>

<bundles_post_ra>
// kernel: fish_tail_forward.5
= control target key start
LH: loop header
LB: loop body
LE: loop exit
PB: predicated region body
PF: predicated region fallthrough
CT: control target
= control target key end

     0   :  { %s583_s21 = smov 0   ;;  %s619_s0 = inlined_call_operand.vmem [shape: f32[4,1024], index: 0, kind: input, shape index: {}]   ;;  %s620_s1 = inlined_call_operand.vmem [shape: f32[4,1], index: 1, kind: input, shape index: {}]   ;;  %s621_s2 = inlined_call_operand.vmem [shape: f32[4,1], index: 2, kind: input, shape index: {}]   ;;  %s622_s3 = inlined_call_operand.vmem [shape: bf16[4,4], index: 3, kind: input, shape index: {}]   ;;  %s623_s4 = inlined_call_operand.vmem [shape: f32[4,1], index: 4, kind: input, shape index: {}]   ;;  %s624_s5 = inlined_call_operand.vmem [shape: f32[4,1], index: 5, kind: input, shape index: {}]   ;;  %s625_s6 = inlined_call_operand.vmem [shape: bf16[4,1024], index: 6, kind: output, shape index: {}]  }
   0x1 LB: > { %s507_s22 = sadd.s32 4294967295, %s543_s21   ;;  %p511_p0 = scmp.ge.s32.totalorder %s543_s21, 1  ;;  %s543_s21 = sphi %s583_s21, %s16_s21  }
   0x2   : > { %p213_p1 = scmp.lt.s32.totalorder %s543_s21, 3 }
   0x4   : > { %p214_p2 = pnand %p511_p0, %p213_p1 }
   0x5   : > { %v258_v0 = vld [vmem:[%s620_s1] sm:$0xf] (!%p214_p2)  ;;  %v545_v1 = vmov (!%p214_p2), 0   ;;  %s512_s7 = sshll.u32 (!%p214_p2), %s507_s22, 2  ;;  %v546_v5 = vmov (!%p214_p2), 839922192   ;;  %v266_v7 = vlaneseq (!%p214_p2) }
   0x6   : > { %217 = sbr.rel (%p214_p2) target bundleno = 379 (0x17b), region = 44  ;;  %535 = vset.pattern.permute.xlu0 (!%p214_p2), %v545_v1  ;;  %350 = vmatprep.mubr.bf16.mxu0 (!%p214_p2), %v545_v1  ;;  %v273_v2 = vld [vmem:[%s621_s2] sm:$0xf] (!%p214_p2)  ;;  %p244_p3 = scmp.lt.s32.totalorder (!%p214_p2), %s512_s7, 7  ;;  %v264_v6 = vunpack.c.l.s4 (!%p214_p2), %v546_v5  ;;  %vm305_vm0 = vcmask (!%p214_p2), 1041408   ;;  %vm301_vm1 = vcmask (!%p214_p2), 31744  }
   0x7   : > { %261 = vperm.xlu0 (!%p214_p2), %535, %v258_v0   ;;  %391 = vmatprep.mubr.bf16.mxu1 (!%p214_p2), %v545_v1  ;;  %v400_v3 = vld [vmem:[%s623_s4] sm:$0xf] (!%p214_p2)  ;;  %v267_v9 = vshrl.u32 (!%p214_p2), %v266_v7, 7  ;;  %v547_v33 = vmov (!%p214_p2), 1983009808  }
   0x8   : > { %536 = vset.pattern.permute.xlu1 (!%p214_p2), %v545_v1  ;;  %v410_v4 = vld [vmem:[%s624_s5] sm:$0xf] (!%p214_p2)  ;;  %v265_v8 = vunpack.c.0.s8 (!%p214_p2), %v264_v6  ;;  %v435_v34 = vunpack.c.l.s4 (!%p214_p2), %v547_v33 }
   0x9   : > { %403 = vperm.xlu1 (!%p214_p2), %536, %v400_v3   ;;  %v290_v31 = vld [vmem:[%s622_s3] sm:$0x3] (!%p214_p2) }
   0xa   : > { %v268_v10 = vsub.s32 (!%p214_p2), %v265_v8, %v267_v9  ;;  %v436_v42 = vunpack.c.0.s8 (!%p214_p2), %v435_v34 }
   0xb   : > { %276 = vperm.xlu0 (!%p214_p2), %535, %v273_v2  }
   0xc   : > { %v439_v55 = vsub.s32 (!%p214_p2), %v436_v42, %v267_v9 }
   0xd   : > { %413 = vperm.xlu1 %536, %v410_v4   ;;  %s627_s7 = smov (!%p244_p3, %s512_s7), 7 }
   0xe   : > { %s513_s8 = sshll.u32 %s627_s7, 2  ;;  %s515_s14 = sshll.u32 %s627_s7, 1 }
   0xf   : > { %s247_s11 = scalar_lea.vmem %s619_s0, %s513_s8  ;;  %s253_s17 = scalar_lea.vmem %s625_s6, %s515_s14 }
  0x10   : > { %v256_v13 = vld [vmem:[%s247_s11] sm:$0xff]  ;;  %v257_v14 = vld [vmem:[%s247_s11 + $0x8] sm:$0xff] }
  0x86   : > { %v262_v11 = vpop.permute.xlu0 %261 }
  0x87   : > { %v269_v12 = vrot.slane %v262_v11, %v268_v10 }
  0x88   : > { %v404_v32 = vpop.permute.xlu1 %403 }
  0x89   : > { %v271_v16 = vmul.f32 %v269_v12, %v256_v13  ;;  %v272_v17 = vmul.f32 %v269_v12, %v257_v14 }
  0x8a   : > { %v277_v15 = vpop.permute.xlu0 %276 }
  0x8b   : > { %v284_v18 = vrot.slane %v277_v15, %v268_v10 }
  0x8c   : > { %v414_v35 = vpop.permute.xlu1 %413 }
  0x8d   : > { %v286_v19 = vadd.f32 %v284_v18, %v271_v16  ;;  %v287_v20 = vadd.f32 %v284_v18, %v272_v17 }
  0x8f   : > { %v288_v21 = vmax.f32 %v286_v19, 0.0  ;;  %v289_v22 = vmax.f32 %v287_v20, 0.0 }
  0x91   : > { %v293_v23 = vcombine.high %v288_v21, %v288_v21  ;;  %v294_v24 = vcombine.high %v289_v22, %v289_v22  ;;  %v297_v25 = vpack.c.bf16 %v288_v21, %v288_v21  ;;  %v299_v26 = vpack.c.bf16 %v289_v22, %v289_v22 }
  0x93   : > { %v298_v27 = vpack.c.bf16 %v293_v23, %v293_v23  ;;  %v300_v28 = vpack.c.bf16 %v294_v24, %v294_v24  ;;  %v307_v29 = vsel %vm305_vm0, %v297_v25, 0  ;;  %v313_v30 = vsel %vm305_vm0, %v299_v26, 0 }
  0x95   : > { %516 = vmatprep.subr.msk.bf16.mxu0 %vm305_vm0, %v298_v27  ;;  %518 = vmatprep.subr.msk.bf16.mxu1 %vm305_vm0, %v300_v28 }
  0x96   : > { %319 = vmatpush1.bf16.msra.mxu0 %v307_v29  ;;  %360 = vmatpush1.bf16.msra.mxu1 %v313_v30 }
  0x99   : > { %517 = vmatmul.mubr.msk.bf16.vlgmr.msra.gmra.mrb[0].mxu0 %vm301_vm1, %v290_v31  ;;  %519 = vmatmul.mubr.msk.bf16.vlgmr.msra.gmra.mrb[0].mxu1 %vm301_vm1, %v290_v31 }
 0x16c   : > { %v352_v36 = vpop.f32.mrb[0].mxu0  ;;  %v393_v37 = vpop.f32.mrb[0].mxu1 }
 0x16d   : > { %v406_v38 = vmul.f32 %v404_v32, %v352_v36  ;;  %v408_v39 = vmul.f32 %v404_v32, %v393_v37  ;;  %v354_v40 = vpop.f32.mrb[1].mxu0  ;;  %v395_v41 = vpop.f32.mrb[1].mxu1 }
 0x16e   : > { %v407_v43 = vmul.f32 %v404_v32, %v354_v40  ;;  %v409_v44 = vmul.f32 %v404_v32, %v395_v41  ;;  %v356_v45 = vpop.f32.mrb[2].mxu0  ;;  %v397_v46 = vpop.f32.mrb[2].mxu1 }
 0x16f   : > { %v416_v47 = vadd.f32 %v414_v35, %v406_v38  ;;  %v418_v48 = vadd.f32 %v414_v35, %v408_v39  ;;  %v357_v49 = vpop.f32.mrb[3].mxu0  ;;  %v398_v50 = vpop.f32.mrb[3].mxu1 }
 0x170   : > { %v417_v51 = vadd.f32 %v414_v35, %v407_v43  ;;  %v419_v52 = vadd.f32 %v414_v35, %v409_v44 }
 0x171   : > { %v420_v53 = vmax.f32 %v416_v47, 0.0  ;;  %v422_v54 = vmax.f32 %v418_v48, 0.0 }
 0x172   : > { %v421_v56 = vmax.f32 %v417_v51, 0.0  ;;  %v423_v57 = vmax.f32 %v419_v52, 0.0 }
 0x174   : > { %v520_v58 = vpack.c.bf16 %v421_v56, %v420_v53  ;;  %v521_v59 = vpack.c.bf16 %v423_v57, %v422_v54 }
 0x176   : > { %v440_v60 = vrot.slane %v520_v58, %v439_v55  ;;  %v447_v61 = vrot.slane %v521_v59, %v439_v55 }
 0x178   : > { %v448_v62 = vcombine.low %v440_v60, %v447_v61 }
 0x17a   : > { %450 = vst [vmem:[%s253_s17] sm:$0xff] %v448_v62 }
 0x17b PF: > { %s16_s21 = sadd.s32 1, %s543_s21  }
 0x17c   : > { %p13_p4 = scmp.ge.s32.totalorder %s16_s21, 4  }
 0x17e   :  { %15 = sbr.rel (!%p13_p4) target bundleno = 1 (0x1), region = 74 }

// kernel: fish_tail_forward.6
= control target key start
LH: loop header
LB: loop body
LE: loop exit
PB: predicated region body
PF: predicated region fallthrough
CT: control target
= control target key end

     0   :  { %s1314_s30 = smov 0   ;;  %s1316_s10 = smov 0   ;;  %s1531_s0 = inlined_call_operand.vmem [shape: bf16[108,1024], index: 0, kind: input, shape index: {}]   ;;  %s1532_s1 = inlined_call_operand.vmem [shape: f32[4,1024], index: 1, kind: input, shape index: {}]   ;;  %s1533_s2 = inlined_call_operand.vmem [shape: bf16[4,108], index: 2, kind: input, shape index: {}]   ;;  %s1534_s3 = inlined_call_operand.vmem [shape: f32[4,1], index: 3, kind: input, shape index: {}]   ;;  %s1535_s4 = inlined_call_operand.vmem [shape: f32[4,1], index: 4, kind: input, shape index: {}]   ;;  %s1536_s5 = inlined_call_operand.vmem [shape: bf16[16,4], index: 5, kind: input, shape index: {}]   ;;  %s1537_s6 = inlined_call_operand.vmem [shape: f32[4,1], index: 6, kind: input, shape index: {}]   ;;  %s1538_s7 = inlined_call_operand.vmem [shape: f32[4,1], index: 7, kind: input, shape index: {}]   ;;  %s1539_s8 = inlined_call_operand.vmem [shape: bf16[16,4], index: 8, kind: input, shape index: {}]   ;;  %s1540_s9 = inlined_call_operand.vmem [shape: f32[16,1024], index: 9, kind: output, shape index: {}]  }
   0x1   :  { %s1318_s11 = smov 0  }
   0x2 LB: > { %s1330_s12 = sadd.s32 4294967295, %s1260_s11   ;;  %s1333_s13 = sadd.s32 1, %s1260_s11   ;;  %s1260_s11 = sphi %s1318_s11, %s1544_s11   ;;  %s1256_s10 = sphi %s1316_s10, %s1543_s10   ;;  %s1252_s30 = sphi %s1314_s30, %s1542_s30  }
   0x3   : > { %s23_s14 = ssub.s32 %s1260_s11, %s1333_s13  ;;  %s26_s15 = sadd.s32 1, %s1256_s10 }
   0x4   : > { %p24_p0 = scmp.eq.s32.totalorder %s23_s14, 0  ;;  %p33_p1 = scmp.ne.s32.totalorder %s1256_s10, %s1252_s30 }
   0x5   : > { %p34_p2 = scmp.eq.s32.totalorder %s1260_s11, 0  ;;  %p236_p3 = scmp.eq.s32.totalorder %s1330_s12, 1 }
   0x6   : > { %s1343_s16 = scalar_select %p24_p0, %s1256_s10, %s26_s15  }
   0x7   : > { %p35_p4 = por %p34_p2, %p33_p1  ;;  %p1345_p5 = por %p236_p3, %p33_p1 }
   0x8   : > { %p1100_p6 = scmp.ge.s32.totalorder %s1260_s11, 2 }
   0xa   : > { %279 = sbr.rel (%p1100_p6) target bundleno = 35 (0x23), region = 44 }
  0x11   : > { %282 = sbr.rel (!%p35_p4) target bundleno = 35 (0x23), region = 48  ;;  %s284_s18 = sand.u32 (%p35_p4), 1, %s1256_s10  }
  0x12   : > { %s1154_s19 = sshll.u32 (%p35_p4), %s1260_s11, 4  ;;  %s1164_s20 = smul.u32 (%p35_p4), 224, %s284_s18 }
  0x13   : > { %s1355_s23 = scalar_lea.vmem (%p35_p4), %s1531_s0, %s1154_s19 }
  0x14   : > { %v302_v0 = vld [vmem:[%s1355_s23] sm:$0xff] (%p35_p4)  ;;  %v304_v1 = vld [vmem:[%s1355_s23 + $0x8] sm:$0xff] (%p35_p4)  ;;  %s1363_s24 = scalar_lea.vmem (%p35_p4), [#allocation2], %s1164_s20 }
  0x15   : > { %v306_v2 = vld [vmem:[%s1355_s23 + $0x20] sm:$0xff] (%p35_p4)  ;;  %v308_v3 = vld [vmem:[%s1355_s23 + $0x28] sm:$0xff] (%p35_p4)  ;;  %303 = vst [vmem:[%s1363_s24] sm:$0xff] (%p35_p4), %v302_v0  ;;  %305 = vst [vmem:[%s1363_s24 + $0x8] sm:$0xff] (%p35_p4), %v304_v1 }
  0x16   : > { %v310_v4 = vld [vmem:[%s1355_s23 + $0x40] sm:$0xff] (%p35_p4)  ;;  %v312_v5 = vld [vmem:[%s1355_s23 + $0x48] sm:$0xff] (%p35_p4)  ;;  %307 = vst [vmem:[%s1363_s24 + $0x10] sm:$0xff] (%p35_p4), %v306_v2  ;;  %309 = vst [vmem:[%s1363_s24 + $0x18] sm:$0xff] (%p35_p4), %v308_v3 }
  0x17   : > { %311 = vst [vmem:[%s1363_s24 + $0x20] sm:$0xff] (%p35_p4), %v310_v4  ;;  %313 = vst [vmem:[%s1363_s24 + $0x28] sm:$0xff] (%p35_p4), %v312_v5  ;;  %v314_v6 = vld [vmem:[%s1355_s23 + $0x60] sm:$0xff] (%p35_p4)  ;;  %v316_v7 = vld [vmem:[%s1355_s23 + $0x68] sm:$0xff] (%p35_p4) }
  0x18   : > { %v318_v8 = vld [vmem:[%s1355_s23 + $0x80] sm:$0xff]  ;;  %315 = vst [vmem:[%s1363_s24 + $0x30] sm:$0xff] %v314_v6  ;;  %317 = vst [vmem:[%s1363_s24 + $0x38] sm:$0xff] %v316_v7  ;;  %v320_v9 = vld [vmem:[%s1355_s23 + $0x88] sm:$0xff] }
  0x19   : > { %319 = vst [vmem:[%s1363_s24 + $0x40] sm:$0xff] %v318_v8  ;;  %v322_v10 = vld [vmem:[%s1355_s23 + $0xa0] sm:$0xff]  ;;  %v324_v11 = vld [vmem:[%s1355_s23 + $0xa8] sm:$0xff]  ;;  %321 = vst [vmem:[%s1363_s24 + $0x48] sm:$0xff] %v320_v9 }
  0x1a   : > { %323 = vst [vmem:[%s1363_s24 + $0x50] sm:$0xff] %v322_v10  ;;  %325 = vst [vmem:[%s1363_s24 + $0x58] sm:$0xff] %v324_v11  ;;  %v326_v12 = vld [vmem:[%s1355_s23 + $0xc0] sm:$0xff]  ;;  %v328_v13 = vld [vmem:[%s1355_s23 + $0xc8] sm:$0xff] }
  0x1b   : > { %v330_v14 = vld [vmem:[%s1355_s23 + $0xe0] sm:$0xff]  ;;  %327 = vst [vmem:[%s1363_s24 + $0x60] sm:$0xff] %v326_v12  ;;  %329 = vst [vmem:[%s1363_s24 + $0x68] sm:$0xff] %v328_v13  ;;  %v332_v15 = vld [vmem:[%s1355_s23 + $0xe8] sm:$0xff] }
  0x1c   : > { %331 = vst [vmem:[%s1363_s24 + $0x70] sm:$0xff] %v330_v14  ;;  %v334_v16 = vld [vmem:[%s1355_s23 + $0x100] sm:$0xff]  ;;  %v336_v17 = vld [vmem:[%s1355_s23 + $0x108] sm:$0xff]  ;;  %333 = vst [vmem:[%s1363_s24 + $0x78] sm:$0xff] %v332_v15 }
  0x1d   : > { %335 = vst [vmem:[%s1363_s24 + $0x80] sm:$0xff] %v334_v16  ;;  %337 = vst [vmem:[%s1363_s24 + $0x88] sm:$0xff] %v336_v17  ;;  %v338_v18 = vld [vmem:[%s1355_s23 + $0x120] sm:$0xff]  ;;  %v340_v19 = vld [vmem:[%s1355_s23 + $0x128] sm:$0xff] }
  0x1e   : > { %v342_v20 = vld [vmem:[%s1355_s23 + $0x140] sm:$0xff]  ;;  %339 = vst [vmem:[%s1363_s24 + $0x90] sm:$0xff] %v338_v18  ;;  %341 = vst [vmem:[%s1363_s24 + $0x98] sm:$0xff] %v340_v19  ;;  %v344_v21 = vld [vmem:[%s1355_s23 + $0x148] sm:$0xff] }
  0x1f   : > { %343 = vst [vmem:[%s1363_s24 + $0xa0] sm:$0xff] %v342_v20  ;;  %v346_v22 = vld [vmem:[%s1355_s23 + $0x160] sm:$0xff]  ;;  %v348_v23 = vld [vmem:[%s1355_s23 + $0x168] sm:$0xff]  ;;  %345 = vst [vmem:[%s1363_s24 + $0xa8] sm:$0xff] %v344_v21 }
  0x20   : > { %347 = vst [vmem:[%s1363_s24 + $0xb0] sm:$0xff] %v346_v22  ;;  %349 = vst [vmem:[%s1363_s24 + $0xb8] sm:$0xff] %v348_v23  ;;  %v350_v24 = vld [vmem:[%s1355_s23 + $0x180] sm:$0xff]  ;;  %v352_v25 = vld [vmem:[%s1355_s23 + $0x188] sm:$0xff] }
  0x21   : > { %v354_v26 = vld [vmem:[%s1355_s23 + $0x1a0] sm:$0xff]  ;;  %351 = vst [vmem:[%s1363_s24 + $0xc0] sm:$0xff] %v350_v24  ;;  %353 = vst [vmem:[%s1363_s24 + $0xc8] sm:$0xff] %v352_v25  ;;  %v356_v27 = vld [vmem:[%s1355_s23 + $0x1a8] sm:$0xff] }
  0x22   : > { %355 = vst [vmem:[%s1363_s24 + $0xd0] sm:$0xff] %v354_v26  ;;  %357 = vst [vmem:[%s1363_s24 + $0xd8] sm:$0xff] %v356_v27 }
  0x23 PF: > { %p1103_p7 = scmp.ge.s32.totalorder %s1260_s11, 1  ;;  %p371_p8 = scmp.lt.s32.totalorder %s1260_s11, 3 }
  0x25   : > { %p372_p9 = pnand %p1103_p7, %p371_p8 }
  0x26   : > { %s378_s25 = sand.u32 (!%p372_p9), 1, %s1252_s30   ;;  %v1262_v28 = vmov (!%p372_p9), 0   ;;  %v722_v29 = vld [vmem:[%s1537_s6] sm:$0xf] (!%p372_p9)  ;;  %vm595_vm0 = vcmask (!%p372_p9), 1045504   ;;  %vm591_vm1 = vcmask (!%p372_p9), 883712   ;;  %v730_v2 = vlaneseq (!%p372_p9) }
  0x27   : > { %375 = sbr.rel (%p372_p9) target bundleno = 522 (0x20a), region = 75  ;;  %640 = vmatprep.mubr.bf16.mxu0 (!%p372_p9), %v1262_v28  ;;  %681 = vmatprep.mubr.bf16.mxu1 (!%p372_p9), %v1262_v28  ;;  %v690_v30 = vld [vmem:[%s1534_s3] sm:$0xf] (!%p372_p9)  ;;  %s1105_s23 = sshll.u32 (!%p372_p9), %s1330_s12, 2  ;;  %v1263_v0 = vmov (!%p372_p9), 839922192  }
  0x28   : > { %s1165_s26 = smul.u32 (!%p372_p9), 224, %s378_s25  ;;  %1192 = vset.pattern.permute.xlu0 (!%p372_p9), %v1262_v28  ;;  %1193 = vset.pattern.permute.xlu1 (!%p372_p9), %v1262_v28  ;;  %v737_v31 = vld [vmem:[%s1538_s7] sm:$0xf] (!%p372_p9)  ;;  %p419_p10 = scmp.lt.s32.totalorder (!%p372_p9), %s1105_s23, 7  ;;  %v728_v1 = vunpack.c.l.s4 (!%p372_p9), %v1263_v0  ;;  %v731_v4 = vshrl.u32 (!%p372_p9), %v730_v2, 7  ;;  %vm775_vm2 = vcmask (!%p372_p9), 1041408  }
  0x29   : > { %725 = vperm.xlu0 (!%p372_p9), %1192, %v722_v29   ;;  %693 = vperm.xlu1 (!%p372_p9), %1193, %v690_v30   ;;  %v700_v33 = vld [vmem:[%s1535_s4] sm:$0xf] (!%p372_p9)  ;;  %vm771_vm3 = vcmask (!%p372_p9), 31744  }
  0x2a   : > { %s1433_s18 = scalar_lea.vmem (!%p372_p9), [#allocation2], %s1165_s26  ;;  %v426_v63 = vld [vmem:[%s1533_s2] sm:$0x3] (!%p372_p9)  ;;  %v729_v3 = vunpack.c.0.s8 (!%p372_p9), %v728_v1 }
  0x2b   : > { %v1194_v32 = vld [vmem:[%s1433_s18 + $0x4] ss:$16 sps:$4 sm:$0xff] (!%p372_p9)   ;;  %v1196_v34 = vld [vmem:[%s1433_s18 + $0xc] ss:$16 sps:$4 sm:$0xff] (!%p372_p9)   ;;  %v1198_v35 = vld [vmem:[%s1433_s18] ss:$16 sps:$4 sm:$0xff] (!%p372_p9)  }
  0x2c   : > { %608 = vmatprep.subr.bf16.mxu0 (!%p372_p9), %v1194_v32  ;;  %v1199_v36 = vld [vmem:[%s1433_s18 + $0x8] ss:$16 sps:$4 sm:$0xff] (!%p372_p9)   ;;  %649 = vmatprep.subr.bf16.mxu1 (!%p372_p9), %v1196_v34  ;;  %v1200_v37 = vld [vmem:[%s1433_s18 + $0x24] ss:$16 sps:$4 sm:$0xff] (!%p372_p9)   ;;  %v1202_v38 = vld [vmem:[%s1433_s18 + $0x2c] ss:$16 sps:$4 sm:$0xff] (!%p372_p9)   ;;  %v732_v5 = vsub.s32 (!%p372_p9), %v729_v3, %v731_v4 }
  0x2d   : > { %740 = vperm.xlu0 (!%p372_p9), %1192, %v737_v31   ;;  %609 = vmatpush1.bf16.msra.mxu0 (!%p372_p9), %v1198_v35  ;;  %v1204_v39 = vld [vmem:[%s1433_s18 + $0x20] ss:$16 sps:$4 sm:$0xff] (!%p372_p9)   ;;  %v1205_v40 = vld [vmem:[%s1433_s18 + $0x28] ss:$16 sps:$4 sm:$0xff] (!%p372_p9)   ;;  %v1206_v41 = vld [vmem:[%s1433_s18 + $0x44] ss:$16 sps:$4 sm:$0xff] (!%p372_p9)  }
  0x2e   : > { %650 = vmatpush1.bf16.msra.mxu1 %v1199_v36  ;;  %610 = vmatprep.subr.bf16.mxu0 %v1200_v37  ;;  %v1208_v42 = vld [vmem:[%s1433_s18 + $0x4c] ss:$16 sps:$4 sm:$0xff]   ;;  %v1210_v43 = vld [vmem:[%s1433_s18 + $0x40] ss:$16 sps:$4 sm:$0xff]   ;;  %v1211_v44 = vld [vmem:[%s1433_s18 + $0x48] ss:$16 sps:$4 sm:$0xff]  }
  0x2f   : > { %703 = vperm.xlu1 %1193, %v700_v33   ;;  %651 = vmatprep.subr.bf16.mxu1 %v1202_v38  ;;  %v1212_v45 = vld [vmem:[%s1433_s18 + $0x64] ss:$16 sps:$4 sm:$0xff]   ;;  %v1214_v46 = vld [vmem:[%s1433_s18 + $0x6c] ss:$16 sps:$4 sm:$0xff]   ;;  %v1216_v47 = vld [vmem:[%s1433_s18 + $0x60] ss:$16 sps:$4 sm:$0xff]  }
  0x30   : > { %v1217_v48 = vld [vmem:[%s1433_s18 + $0x68] ss:$16 sps:$4 sm:$0xff]   ;;  %v1218_v49 = vld [vmem:[%s1433_s18 + $0x84] ss:$16 sps:$4 sm:$0xff]   ;;  %v1220_v50 = vld [vmem:[%s1433_s18 + $0x8c] ss:$16 sps:$4 sm:$0xff]  }
  0x31   : > { %611 = vmatpush1.bf16.msra.mxu0 %v1204_v39  ;;  %v1222_v51 = vld [vmem:[%s1433_s18 + $0x80] ss:$16 sps:$4 sm:$0xff]   ;;  %v1223_v52 = vld [vmem:[%s1433_s18 + $0x88] ss:$16 sps:$4 sm:$0xff]   ;;  %v1224_v53 = vld [vmem:[%s1433_s18 + $0xa4] ss:$16 sps:$4 sm:$0xff]  }
  0x32   : > { %652 = vmatpush1.bf16.msra.mxu1 %v1205_v40  ;;  %612 = vmatprep.subr.bf16.mxu0 %v1206_v41  ;;  %v1226_v54 = vld [vmem:[%s1433_s18 + $0xac] ss:$16 sps:$4 sm:$0xff]   ;;  %v1228_v55 = vld [vmem:[%s1433_s18 + $0xa0] ss:$16 sps:$4 sm:$0xff]   ;;  %v1229_v58 = vld [vmem:[%s1433_s18 + $0xa8] ss:$16 sps:$4 sm:$0xff]  }
  0x33   : > { %653 = vmatprep.subr.bf16.mxu1 %v1208_v42  ;;  %v1230_v56 = vld [vmem:[%s1433_s18 + $0xc4] ss:$16 sps:$4 sm:$0x3f]   ;;  %v1232_v57 = vld [vmem:[%s1433_s18 + $0xcc] ss:$16 sps:$4 sm:$0x3f]  }
  0x34   : > { %v1234_v59 = vld [vmem:[%s1433_s18 + $0xc0] ss:$16 sps:$4 sm:$0x3f]   ;;  %v1235_v60 = vld [vmem:[%s1433_s18 + $0xc8] ss:$16 sps:$4 sm:$0x3f]  }
  0x35   : > { %613 = vmatpush1.bf16.msra.mxu0 %v1210_v43  ;;  %v597_v61 = vsel %vm595_vm0, %v1234_v59, 0  ;;  %v603_v62 = vsel %vm595_vm0, %v1235_v60, 0  ;;  %s1546_s23 = smov (!%p419_p10, %s1105_s23), 7  ;;  %v1236_v26 = vld [vmem:[%s1539_s8] sm:$0xff]   ;;  %s1104_s18 = sshll.u32 %s378_s25, 6 }
  0x36   : > { %654 = vmatpush1.bf16.msra.mxu1 %v1211_v44  ;;  %614 = vmatprep.subr.bf16.mxu0 %v1212_v45  ;;  %s1106_s24 = sshll.u32 %s1546_s23, 2  ;;  %s1497_s19 = scalar_lea.vmem [#allocation3], %s1104_s18 }
  0x37   : > { %655 = vmatprep.subr.bf16.mxu1 %v1214_v46  ;;  %s422_s28 = scalar_lea.vmem %s1532_s1, %s1106_s24  ;;  %s1155_s30 = sshll.u32 (%p1345_p5), %s1330_s12, 5 }
  0x38   : > { %v720_v7 = vld [vmem:[%s422_s28] sm:$0xff]  ;;  %v721_v8 = vld [vmem:[%s422_s28 + $0x8] sm:$0xff]  ;;  %s997_s21 = scalar_lea.vmem (%p1345_p5), %s1540_s9, %s1155_s30 }
  0x39   : > { %615 = vmatpush1.bf16.msra.mxu0 %v1216_v47 }
  0x3a   : > { %656 = vmatpush1.bf16.msra.mxu1 %v1217_v48  ;;  %616 = vmatprep.subr.bf16.mxu0 %v1218_v49 }
  0x3b   : > { %657 = vmatprep.subr.bf16.mxu1 %v1220_v50 }
  0x3d   : > { %617 = vmatpush1.bf16.msra.mxu0 %v1222_v51 }
  0x3e   : > { %658 = vmatpush1.bf16.msra.mxu1 %v1223_v52  ;;  %618 = vmatprep.subr.bf16.mxu0 %v1224_v53 }
  0x3f   : > { %659 = vmatprep.subr.bf16.mxu1 %v1226_v54 }
  0x41   : > { %619 = vmatpush1.bf16.msra.mxu0 %v1228_v55  ;;  %v1237_v55 = vld [vmem:[%s1536_s5] sm:$0xff]  }
  0x42   : > { %660 = vmatpush1.bf16.msra.mxu1 %v1229_v58  ;;  %1135 = vmatprep.subr.msk.bf16.mxu0 %vm595_vm0, %v1230_v56 }
  0x43   : > { %1137 = vmatprep.subr.msk.bf16.mxu1 %vm595_vm0, %v1232_v57 }
  0x45   : > { %621 = vmatpush1.bf16.msra.mxu0 %v597_v61 }
  0x46   : > { %662 = vmatpush1.bf16.msra.mxu1 %v603_v62 }
  0x48   : > { %1136 = vmatmul.mubr.msk.bf16.vlgmr.msra.gmra.mrb[0].mxu0 %vm591_vm1, %v426_v63 }
  0x49   : > { %1138 = vmatmul.mubr.msk.bf16.vlgmr.msra.gmra.mrb[0].mxu1 %vm591_vm1, %v426_v63  ;;  %820 = vmatprep.mubr.bf16.mxu0 %v1262_v28 }
  0x4a   : > { %863 = vmatprep.mubr.bf16.mxu1 %v1262_v28 }
  0xa8   : > { %v726_v6 = vpop.permute.xlu0 %725  ;;  %v694_v27 = vpop.permute.xlu1 %693 }
  0xa9   : > { %v733_v9 = vrot.slane %v726_v6, %v732_v5 }
  0xab   : > { %v735_v10 = vmul.f32 %v733_v9, %v720_v7  ;;  %v736_v11 = vmul.f32 %v733_v9, %v721_v8 }
  0xac   : > { %v741_v12 = vpop.permute.xlu0 %740 }
  0xad   : > { %v748_v13 = vrot.slane %v741_v12, %v732_v5 }
  0xae   : > { %v704_v29 = vpop.permute.xlu1 %703 }
  0xaf   : > { %v750_v14 = vadd.f32 %v748_v13, %v735_v10  ;;  %v751_v15 = vadd.f32 %v748_v13, %v736_v11 }
  0xb1   : > { %v752_v16 = vmax.f32 %v750_v14, 0.0  ;;  %v753_v17 = vmax.f32 %v751_v15, 0.0 }
  0xb3   : > { %v758_v18 = vcombine.high %v752_v16, %v752_v16  ;;  %v759_v19 = vcombine.high %v753_v17, %v753_v17  ;;  %v762_v20 = vpack.c.bf16 %v752_v16, %v752_v16  ;;  %v764_v21 = vpack.c.bf16 %v753_v17, %v753_v17 }
  0xb5   : > { %v763_v22 = vpack.c.bf16 %v758_v18, %v758_v18  ;;  %v765_v23 = vpack.c.bf16 %v759_v19, %v759_v19  ;;  %v777_v24 = vsel %vm775_vm2, %v762_v20, 0  ;;  %v783_v25 = vsel %vm775_vm2, %v764_v21, 0 }
  0xb7   : > { %1140 = vmatprep.subr.msk.bf16.mxu0 %vm775_vm2, %v763_v22  ;;  %1142 = vmatprep.subr.msk.bf16.mxu1 %vm775_vm2, %v765_v23 }
  0xb8   : > { %789 = vmatpush1.bf16.msra.mxu0 %v777_v24  ;;  %832 = vmatpush1.bf16.msra.mxu1 %v783_v25 }
  0xbb   : > { %1141 = vmatmul.mubr.msk.bf16.vlgmr.msra.gmra.mrb[4].mxu0 %vm771_vm3, %v1236_v26  ;;  %1143 = vmatmul.mubr.msk.bf16.vlgmr.msra.gmra.mrb[4].mxu1 %vm771_vm3, %v1236_v26 }
  0xbc   : > { %926 = vmatprep.mubr.bf16.mxu0 %v1262_v28  ;;  %969 = vmatprep.mubr.bf16.mxu1 %v1262_v28 }
 0x11b   : > { %v642_v30 = vpop.f32.mrb[0].mxu0 }
 0x11c   : > { %v683_v31 = vpop.f32.mrb[0].mxu1  ;;  %v696_v32 = vmul.f32 %v694_v27, %v642_v30  ;;  %v644_v34 = vpop.f32.mrb[1].mxu0 }
 0x11d   : > { %v698_v33 = vmul.f32 %v694_v27, %v683_v31  ;;  %v685_v35 = vpop.f32.mrb[1].mxu1  ;;  %v697_v36 = vmul.f32 %v694_v27, %v644_v34  ;;  %v646_v38 = vpop.f32.mrb[2].mxu0 }
 0x11e   : > { %v699_v37 = vmul.f32 %v694_v27, %v685_v35  ;;  %v687_v39 = vpop.f32.mrb[2].mxu1  ;;  %v706_v40 = vadd.f32 %v704_v29, %v696_v32  ;;  %v647_v42 = vpop.f32.mrb[3].mxu0 }
 0x11f   : > { %v708_v41 = vadd.f32 %v704_v29, %v698_v33  ;;  %v688_v43 = vpop.f32.mrb[3].mxu1  ;;  %v707_v44 = vadd.f32 %v704_v29, %v697_v36 }
 0x120   : > { %v709_v45 = vadd.f32 %v704_v29, %v699_v37  ;;  %v710_v46 = vmax.f32 %v706_v40, 0.0 }
 0x121   : > { %v712_v28 = vmax.f32 %v708_v41, 0.0  ;;  %v711_v47 = vmax.f32 %v707_v44, 0.0 }
 0x122   : > { %v713_v48 = vmax.f32 %v709_v45, 0.0  ;;  %v716_v49 = vpack.c.bf16 %v710_v46, %v710_v46 }
 0x123   : > { %v718_v50 = vpack.c.bf16 %v712_v28, %v712_v28  ;;  %v717_v51 = vpack.c.bf16 %v711_v47, %v711_v47 }
 0x124   : > { %v719_v52 = vpack.c.bf16 %v713_v48, %v713_v48  ;;  %v883_v53 = vsel %vm775_vm2, %v716_v49, 0 }
 0x125   : > { %v889_v54 = vsel %vm775_vm2, %v718_v50, 0  ;;  %1145 = vmatprep.subr.msk.bf16.mxu0 %vm775_vm2, %v717_v51 }
 0x126   : > { %1147 = vmatprep.subr.msk.bf16.mxu1 %vm775_vm2, %v719_v52  ;;  %895 = vmatpush1.bf16.msra.mxu0 %v883_v53 }
 0x127   : > { %938 = vmatpush1.bf16.msra.mxu1 %v889_v54 }
 0x129   : > { %1146 = vmatmul.mubr.msk.bf16.vlgmr.msra.gmra.mrb[4].mxu0 %vm771_vm3, %v1237_v55 }
 0x12a   : > { %1148 = vmatmul.mubr.msk.bf16.vlgmr.msra.gmra.mrb[4].mxu1 %vm771_vm3, %v1237_v55 }
 0x1fb   : > { %994 = sbr.rel (!%p1345_p5) target bundleno = 522 (0x20a), region = 83 }
 0x1fc   : > { %v928_v56 = vpop.f32.mrb[4].mxu0 }
 0x1fd   : > { %v971_v57 = vpop.f32.mrb[4].mxu1  ;;  %980 = vst [vmem:[%s1497_s19] sm:$0xff] %v928_v56  ;;  %v930_v58 = vpop.f32.mrb[5].mxu0 }
 0x1fe   : > { %982 = vst [vmem:[%s1497_s19 + $0x10] sm:$0xff] %v971_v57  ;;  %v973_v59 = vpop.f32.mrb[5].mxu1  ;;  %981 = vst [vmem:[%s1497_s19 + $0x8] sm:$0xff] %v930_v58  ;;  %v932_v60 = vpop.f32.mrb[6].mxu0 }
 0x1ff   : > { %983 = vst [vmem:[%s1497_s19 + $0x18] sm:$0xff] %v973_v59  ;;  %v975_v61 = vpop.f32.mrb[6].mxu1  ;;  %984 = vst [vmem:[%s1497_s19 + $0x20] sm:$0xff] %v932_v60  ;;  %v934_v62 = vpop.f32.mrb[7].mxu0 }
 0x200   : > { %986 = vst [vmem:[%s1497_s19 + $0x30] sm:$0xff] %v975_v61  ;;  %v977_v63 = vpop.f32.mrb[7].mxu1  ;;  %985 = vst [vmem:[%s1497_s19 + $0x28] sm:$0xff] %v934_v62 }
 0x201   : > { %987 = vst [vmem:[%s1497_s19 + $0x38] sm:$0xff] %v977_v63 }
 0x204   : > { %v1010_v0 = vld [vmem:[%s1497_s19] sm:$0xff] }
 0x205   : > { %v1012_v1 = vld [vmem:[%s1497_s19 + $0x8] sm:$0xff]  ;;  %v1014_v2 = vld [vmem:[%s1497_s19 + $0x10] sm:$0xff]  ;;  %1011 = vst [vmem:[%s997_s21] sm:$0xff] %v1010_v0 }
 0x206   : > { %v1016_v3 = vld [vmem:[%s1497_s19 + $0x18] sm:$0xff]  ;;  %v1018_v4 = vld [vmem:[%s1497_s19 + $0x20] sm:$0xff]  ;;  %1013 = vst [vmem:[%s997_s21 + $0x8] sm:$0xff] %v1012_v1  ;;  %1015 = vst [vmem:[%s997_s21 + $0x10] sm:$0xff] %v1014_v2 }
 0x207   : > { %v1020_v5 = vld [vmem:[%s1497_s19 + $0x28] sm:$0xff]  ;;  %1017 = vst [vmem:[%s997_s21 + $0x18] sm:$0xff] %v1016_v3  ;;  %1019 = vst [vmem:[%s997_s21 + $0x40] sm:$0xff] %v1018_v4  ;;  %v1022_v6 = vld [vmem:[%s1497_s19 + $0x30] sm:$0xff] }
 0x208   : > { %1021 = vst [vmem:[%s997_s21 + $0x48] sm:$0xff] %v1020_v5  ;;  %v1024_v7 = vld [vmem:[%s1497_s19 + $0x38] sm:$0xff]  ;;  %1023 = vst [vmem:[%s997_s21 + $0x50] sm:$0xff] %v1022_v6 }
 0x209   : > { %1025 = vst [vmem:[%s997_s21 + $0x58] sm:$0xff] %v1024_v7 }
 0x20a PF: > { %p16_p11 = scmp.ge.s32.totalorder %s1333_s13, 4   ;;  %s1542_s30 = smov %s1256_s10 }
 0x20b   : > { %s1543_s10 = smov %s1343_s16  ;;  %s1544_s11 = smov %s1333_s13 }
 0x20c   :  { %18 = sbr.rel (!%p16_p11) target bundleno = 2 (0x2), region = 140 }

// kernel: fish_tail_forward.7
= control target key start
LH: loop header
LB: loop body
LE: loop exit
PB: predicated region body
PF: predicated region fallthrough
CT: control target
= control target key end

     0   :  { %s656_s21 = smov 0   ;;  %s658_s22 = smov 0   ;;  %s730_s0 = inlined_call_operand.vmem [shape: f32[16,1024], index: 0, kind: input, shape index: {}]   ;;  %s731_s1 = inlined_call_operand.vmem [shape: f32[16,1], index: 1, kind: input, shape index: {}]   ;;  %s732_s2 = inlined_call_operand.vmem [shape: f32[16,1], index: 2, kind: input, shape index: {}]   ;;  %s733_s3 = inlined_call_operand.vmem [shape: bf16[4,16], index: 3, kind: input, shape index: {}]   ;;  %s734_s4 = inlined_call_operand.vmem [shape: f32[4,1], index: 4, kind: input, shape index: {}]   ;;  %s735_s5 = inlined_call_operand.vmem [shape: f32[4,1], index: 5, kind: input, shape index: {}]   ;;  %s736_s6 = inlined_call_operand.vmem [shape: bf16[4,1024], index: 6, kind: output, shape index: {}]  }
   0x1   :  { %s660_s23 = smov 0  }
   0x2 LB: > { %s549_s24 = sadd.s32 4294967295, %s617_s23   ;;  %s673_s25 = sadd.s32 1, %s617_s23   ;;  %s617_s23 = sphi %s660_s23, %s739_s23   ;;  %s613_s22 = sphi %s658_s22, %s738_s22   ;;  %s609_s21 = sphi %s656_s21, %s737_s21  }
   0x3   : > { %s20_s26 = ssub.s32 %s617_s23, %s673_s25  ;;  %s23_s27 = sadd.s32 1, %s613_s22 }
   0x4   : > { %p21_p0 = scmp.eq.s32.totalorder %s20_s26, 0  ;;  %p30_p1 = scmp.ne.s32.totalorder %s613_s22, %s609_s21 }
   0x5   : > { %p31_p2 = scmp.eq.s32.totalorder %s617_s23, 0  ;;  %p552_p4 = scmp.ge.s32.totalorder %s617_s23, 2 }
   0x6   : > { %s682_s28 = scalar_select %p21_p0, %s613_s22, %s23_s27  }
   0x7   : > { %p32_p3 = por %p31_p2, %p30_p1  ;;  %202 = sbr.rel (%p552_p4) target bundleno = 22 (0x16), region = 36 }
   0xe   : > { %205 = sbr.rel (!%p32_p3) target bundleno = 22 (0x16), region = 40  ;;  %s207_s29 = sand.u32 (%p32_p3), 1, %s613_s22  }
   0xf   : > { %s566_s30 = sshll.u32 (%p32_p3), %s617_s23, 5  ;;  %s553_s7 = sshll.u32 (%p32_p3), %s207_s29, 6 }
  0x10   : > { %s212_s10 = scalar_lea.vmem (%p32_p3), %s730_s0, %s566_s30  ;;  %s209_s11 = scalar_lea.vmem (%p32_p3), [#allocation2], %s553_s7 }
  0x11   : > { %v225_v0 = vld [vmem:[%s212_s10] sm:$0xff] (%p32_p3)  ;;  %v227_v1 = vld [vmem:[%s212_s10 + $0x8] sm:$0xff] (%p32_p3)  ;;  %v229_v2 = vld [vmem:[%s212_s10 + $0x10] sm:$0xff] (%p32_p3) }
  0x12   : > { %226 = vst [vmem:[%s209_s11] sm:$0xff] (%p32_p3), %v225_v0  ;;  %228 = vst [vmem:[%s209_s11 + $0x8] sm:$0xff] (%p32_p3), %v227_v1  ;;  %v231_v3 = vld [vmem:[%s212_s10 + $0x18] sm:$0xff] (%p32_p3)  ;;  %v233_v4 = vld [vmem:[%s212_s10 + $0x40] sm:$0xff] (%p32_p3) }
  0x13   : > { %230 = vst [vmem:[%s209_s11 + $0x10] sm:$0xff] (%p32_p3), %v229_v2  ;;  %v235_v5 = vld [vmem:[%s212_s10 + $0x48] sm:$0xff] (%p32_p3)  ;;  %232 = vst [vmem:[%s209_s11 + $0x18] sm:$0xff] (%p32_p3), %v231_v3  ;;  %v237_v6 = vld [vmem:[%s212_s10 + $0x50] sm:$0xff] (%p32_p3) }
  0x14   : > { %234 = vst [vmem:[%s209_s11 + $0x20] sm:$0xff] (%p32_p3), %v233_v4  ;;  %236 = vst [vmem:[%s209_s11 + $0x28] sm:$0xff] (%p32_p3), %v235_v5  ;;  %v239_v7 = vld [vmem:[%s212_s10 + $0x58] sm:$0xff] (%p32_p3) }
  0x15   : > { %238 = vst [vmem:[%s209_s11 + $0x30] sm:$0xff] %v237_v6  ;;  %240 = vst [vmem:[%s209_s11 + $0x38] sm:$0xff] %v239_v7 }
  0x16 PF: > { %p556_p5 = scmp.ge.s32.totalorder %s617_s23, 1  ;;  %p245_p6 = scmp.lt.s32.totalorder %s617_s23, 3 }
  0x18   : > { %p246_p7 = pnand %p556_p5, %p245_p6 }
  0x19   : > { %v317_v8 = vld [vmem:[%s732_s2] sm:$0xff] (!%p246_p7)  ;;  %v619_v10 = vmov (!%p246_p7), 0   ;;  %v318_v11 = vld [vmem:[%s732_s2 + $0x8] sm:$0xff] (!%p246_p7)  ;;  %s252_s30 = sand.u32 (!%p246_p7), 1, %s609_s21   ;;  %vm350_vm0 = vcmask (!%p246_p7), 130048   ;;  %v473_v58 = vlaneseq (!%p246_p7)  ;;  %s558_s10 = sshll.u32 (!%p246_p7), %s549_s24, 2 }
  0x1a   : > { %249 = sbr.rel (%p246_p7) target bundleno = 397 (0x18d), region = 63  ;;  %v297_v9 = vld [vmem:[%s731_s1] sm:$0xff] (!%p246_p7)  ;;  %594 = vset.pattern.permute.xlu1 (!%p246_p7), %v619_v10  ;;  %593 = vset.pattern.permute.xlu0 (!%p246_p7), %v619_v10  ;;  %v298_v12 = vld [vmem:[%s731_s1 + $0x8] sm:$0xff] (!%p246_p7)  ;;  %s557_s7 = sshll.u32 (!%p246_p7), %s252_s30, 6  ;;  %v620_v56 = vmov (!%p246_p7), 1983009808  }
  0x1b   : > { %321 = vperm.xlu1 (!%p246_p7), %594, %v317_v8   ;;  %301 = vperm.xlu0 (!%p246_p7), %593, %v297_v9   ;;  %v446_v13 = vld [vmem:[%s735_s5] sm:$0xf] (!%p246_p7)  ;;  %s254_s8 = scalar_lea.vmem (!%p246_p7), [#allocation2], %s557_s7  ;;  %v471_v57 = vunpack.c.l.s4 (!%p246_p7), %v620_v56  ;;  %p283_p8 = scmp.lt.s32.totalorder (!%p246_p7), %s558_s10, 7  ;;  %v474_v4 = vshrl.u32 (!%p246_p7), %v473_v58, 7 }
  0x1c   : > { %386 = vmatprep.mubr.bf16.mxu0 (!%p246_p7), %v619_v10  ;;  %427 = vmatprep.mubr.bf16.mxu1 (!%p246_p7), %v619_v10  ;;  %v436_v14 = vld [vmem:[%s734_s4] sm:$0xf] (!%p246_p7)  ;;  %v291_v16 = vld [vmem:[%s254_s8 + $0x10] sm:$0xff] (!%p246_p7)  ;;  %v290_v17 = vld [vmem:[%s254_s8 + $0x8] sm:$0xff] (!%p246_p7) }
  0x1d   : > { %v289_v15 = vld [vmem:[%s254_s8] sm:$0xff] (!%p246_p7)  ;;  %v292_v18 = vld [vmem:[%s254_s8 + $0x18] sm:$0xff] (!%p246_p7)  ;;  %v295_v25 = vld [vmem:[%s254_s8 + $0x30] sm:$0xff] (!%p246_p7)  ;;  %v472_v3 = vunpack.c.0.s8 (!%p246_p7), %v471_v57 }
  0x1e   : > { %v293_v24 = vld [vmem:[%s254_s8 + $0x20] sm:$0xff] (!%p246_p7)  ;;  %v294_v26 = vld [vmem:[%s254_s8 + $0x28] sm:$0xff] (!%p246_p7)  ;;  %v296_v28 = vld [vmem:[%s254_s8 + $0x38] sm:$0xff] (!%p246_p7) }
  0x1f   : > { %326 = vperm.xlu1 (!%p246_p7), %594, %v318_v11   ;;  %306 = vperm.xlu0 (!%p246_p7), %593, %v298_v12   ;;  %v345_v55 = vld [vmem:[%s733_s3] sm:$0x3] (!%p246_p7) }
  0x21   : > { %s741_s10 = smov (!%p283_p8, %s558_s10), 7 }
  0x22   : > { %s559_s23 = sshll.u32 %s741_s10, 1 }
  0x23   : > { %449 = vperm.xlu1 %594, %v446_v13   ;;  %439 = vperm.xlu0 %593, %v436_v14   ;;  %s286_s12 = scalar_lea.vmem %s736_s6, %s559_s23 }
  0x9a   : > { %v322_v19 = vpop.permute.xlu1 %321  ;;  %v302_v20 = vpop.permute.xlu0 %301 }
  0x9b   : > { %v309_v21 = vmul.f32 %v302_v20, %v289_v15  ;;  %v311_v22 = vmul.f32 %v302_v20, %v291_v16  ;;  %v310_v23 = vmul.f32 %v302_v20, %v290_v17  ;;  %v312_v27 = vmul.f32 %v302_v20, %v292_v18 }
  0x9c   : > { %v475_v18 = vsub.s32 %v472_v3, %v474_v4 }
  0x9d   : > { %v330_v30 = vadd.f32 %v322_v19, %v310_v23  ;;  %v329_v31 = vadd.f32 %v322_v19, %v309_v21  ;;  %v331_v35 = vadd.f32 %v322_v19, %v311_v22  ;;  %v332_v38 = vadd.f32 %v322_v19, %v312_v27 }
  0x9e   : > { %v307_v29 = vpop.permute.xlu0 %306  ;;  %v327_v36 = vpop.permute.xlu1 %326 }
  0x9f   : > { %v313_v32 = vmul.f32 %v307_v29, %v293_v24  ;;  %v315_v33 = vmul.f32 %v307_v29, %v295_v25  ;;  %v314_v34 = vmul.f32 %v307_v29, %v294_v26  ;;  %v316_v37 = vmul.f32 %v307_v29, %v296_v28 }
  0xa0   : > { %v338_v42 = vmax.f32 %v330_v30, 0.0  ;;  %v337_v44 = vmax.f32 %v329_v31, 0.0  ;;  %v339_v47 = vmax.f32 %v331_v35, 0.0  ;;  %v340_v49 = vmax.f32 %v332_v38, 0.0 }
  0xa1   : > { %v334_v39 = vadd.f32 %v327_v36, %v314_v34  ;;  %v333_v40 = vadd.f32 %v327_v36, %v313_v32  ;;  %v335_v41 = vadd.f32 %v327_v36, %v315_v33  ;;  %v336_v43 = vadd.f32 %v327_v36, %v316_v37 }
  0xa2   : > { %v450_v59 = vpop.permute.xlu1 %449  ;;  %v440_v60 = vpop.permute.xlu0 %439 }
  0xa3   : > { %v342_v45 = vmax.f32 %v334_v39, 0.0  ;;  %v341_v46 = vmax.f32 %v333_v40, 0.0  ;;  %v343_v48 = vmax.f32 %v335_v41, 0.0  ;;  %v344_v50 = vmax.f32 %v336_v43, 0.0 }
  0xa5   : > { %v347_v51 = vpack.c.bf16 %v342_v45, %v338_v42  ;;  %v346_v52 = vpack.c.bf16 %v341_v46, %v337_v44  ;;  %v348_v53 = vpack.c.bf16 %v343_v48, %v339_v47  ;;  %v349_v54 = vpack.c.bf16 %v344_v50, %v340_v49 }
  0xa7   : > { %354 = vmatprep.subr.bf16.mxu0 %v347_v51  ;;  %395 = vmatprep.subr.bf16.mxu1 %v349_v54 }
  0xa8   : > { %355 = vmatpush1.bf16.msra.mxu0 %v346_v52  ;;  %396 = vmatpush1.bf16.msra.mxu1 %v348_v53 }
  0xab   : > { %560 = vmatmul.mubr.msk.bf16.vlgmr.msra.gmra.mrb[0].mxu0 %vm350_vm0, %v345_v55  ;;  %561 = vmatmul.mubr.msk.bf16.vlgmr.msra.gmra.mrb[0].mxu1 %vm350_vm0, %v345_v55 }
 0x17e   : > { %v388_v61 = vpop.f32.mrb[0].mxu0  ;;  %v429_v63 = vpop.f32.mrb[0].mxu1 }
 0x17f   : > { %v442_v62 = vmul.f32 %v440_v60, %v388_v61  ;;  %v390_v0 = vpop.f32.mrb[1].mxu0  ;;  %v444_v1 = vmul.f32 %v440_v60, %v429_v63  ;;  %v431_v5 = vpop.f32.mrb[1].mxu1 }
 0x180   : > { %v443_v2 = vmul.f32 %v440_v60, %v390_v0  ;;  %v392_v6 = vpop.f32.mrb[2].mxu0  ;;  %v445_v8 = vmul.f32 %v440_v60, %v431_v5  ;;  %v433_v9 = vpop.f32.mrb[2].mxu1 }
 0x181   : > { %v452_v7 = vadd.f32 %v450_v59, %v442_v62  ;;  %v393_v10 = vpop.f32.mrb[3].mxu0  ;;  %v454_v11 = vadd.f32 %v450_v59, %v444_v1  ;;  %v434_v13 = vpop.f32.mrb[3].mxu1 }
 0x182   : > { %v453_v12 = vadd.f32 %v450_v59, %v443_v2  ;;  %v455_v15 = vadd.f32 %v450_v59, %v445_v8 }
 0x183   : > { %v456_v14 = vmax.f32 %v452_v7, 0.0  ;;  %v458_v16 = vmax.f32 %v454_v11, 0.0 }
 0x184   : > { %v457_v17 = vmax.f32 %v453_v12, 0.0  ;;  %v459_v19 = vmax.f32 %v455_v15, 0.0 }
 0x186   : > { %v562_v20 = vpack.c.bf16 %v457_v17, %v456_v14  ;;  %v563_v21 = vpack.c.bf16 %v459_v19, %v458_v16 }
 0x188   : > { %v476_v22 = vrot.slane %v562_v20, %v475_v18  ;;  %v483_v23 = vrot.slane %v563_v21, %v475_v18 }
 0x18a   : > { %v484_v24 = vcombine.low %v476_v22, %v483_v23 }
 0x18c   : > { %486 = vst [vmem:[%s286_s12] sm:$0xff] %v484_v24 }
 0x18d PF: > { %p13_p9 = scmp.ge.s32.totalorder %s673_s25, 4   ;;  %s737_s21 = smov %s613_s22 }
 0x18e   : > { %s738_s22 = smov %s682_s28  ;;  %s739_s23 = smov %s673_s25 }
 0x18f   :  { %15 = sbr.rel (!%p13_p9) target bundleno = 2 (0x2), region = 102 }

// kernel: fish_tail_forward.8
= control target key start
LH: loop header
LB: loop body
LE: loop exit
PB: predicated region body
PF: predicated region fallthrough
CT: control target
= control target key end

     0   :  { %s1099_s21 = smov 0   ;;  %s1101_s22 = smov 0   ;;  %s1301_s0 = inlined_call_operand.vmem [shape: bf16[108,1024], index: 0, kind: input, shape index: {}]   ;;  %s1302_s1 = inlined_call_operand.vmem [shape: f32[16,1024], index: 1, kind: input, shape index: {}]   ;;  %s1303_s2 = inlined_call_operand.vmem [shape: bf16[4,108], index: 2, kind: input, shape index: {}]   ;;  %s1304_s3 = inlined_call_operand.vmem [shape: f32[4,1], index: 3, kind: input, shape index: {}]   ;;  %s1305_s4 = inlined_call_operand.vmem [shape: f32[4,1], index: 4, kind: input, shape index: {}]   ;;  %s1306_s5 = inlined_call_operand.vmem [shape: bf16[16,4], index: 5, kind: input, shape index: {}]   ;;  %s1307_s6 = inlined_call_operand.vmem [shape: f32[16,1024], index: 6, kind: output, shape index: {}]  }
   0x1   :  { %s1103_s23 = smov 0  }
   0x2 LB: > { %s911_s24 = sadd.s32 4294967295, %s1061_s23   ;;  %s1116_s25 = sadd.s32 1, %s1061_s23   ;;  %s1061_s23 = sphi %s1103_s23, %s1312_s23   ;;  %s1057_s22 = sphi %s1101_s22, %s1311_s22   ;;  %s1053_s21 = sphi %s1099_s21, %s1310_s21  }
   0x3   : > { %s20_s26 = ssub.s32 %s1061_s23, %s1116_s25  ;;  %s23_s27 = sadd.s32 1, %s1057_s22 }
   0x4   : > { %p21_p0 = scmp.eq.s32.totalorder %s20_s26, 0  ;;  %p30_p1 = scmp.ne.s32.totalorder %s1057_s22, %s1053_s21 }
   0x5   : > { %p31_p2 = scmp.eq.s32.totalorder %s1061_s23, 0  ;;  %p170_p3 = scmp.eq.s32.totalorder %s911_s24, 1 }
   0x6   : > { %s1127_s28 = scalar_select %p21_p0, %s1057_s22, %s23_s27  }
   0x7   : > { %p1129_p4 = por %p31_p2, %p30_p1  ;;  %p1133_p5 = por %p170_p3, %p30_p1 }
   0x8   : > { %p914_p6 = scmp.ge.s32.totalorder %s1061_s23, 2 }
   0xa   : > { %204 = sbr.rel (%p914_p6) target bundleno = 43 (0x2b), region = 32 }
  0x11   : > { %207 = sbr.rel (!%p1129_p4) target bundleno = 35 (0x23), region = 36  ;;  %s209_s7 = sand.u32 (%p1129_p4), 1, %s1057_s22  }
  0x12   : > { %s965_s8 = sshll.u32 (%p1129_p4), %s1061_s23, 4  ;;  %s968_s9 = smul.u32 (%p1129_p4), 224, %s209_s7 }
  0x13   : > { %s1145_s12 = scalar_lea.vmem (%p1129_p4), %s1301_s0, %s965_s8 }
  0x14   : > { %v227_v0 = vld [vmem:[%s1145_s12] sm:$0xff] (%p1129_p4)  ;;  %v229_v1 = vld [vmem:[%s1145_s12 + $0x8] sm:$0xff] (%p1129_p4)  ;;  %s1153_s13 = scalar_lea.vmem (%p1129_p4), [#allocation2], %s968_s9 }
  0x15   : > { %v231_v2 = vld [vmem:[%s1145_s12 + $0x20] sm:$0xff] (%p1129_p4)  ;;  %v233_v3 = vld [vmem:[%s1145_s12 + $0x28] sm:$0xff] (%p1129_p4)  ;;  %228 = vst [vmem:[%s1153_s13] sm:$0xff] (%p1129_p4), %v227_v0  ;;  %230 = vst [vmem:[%s1153_s13 + $0x8] sm:$0xff] (%p1129_p4), %v229_v1 }
  0x16   : > { %v235_v4 = vld [vmem:[%s1145_s12 + $0x40] sm:$0xff] (%p1129_p4)  ;;  %v237_v5 = vld [vmem:[%s1145_s12 + $0x48] sm:$0xff] (%p1129_p4)  ;;  %232 = vst [vmem:[%s1153_s13 + $0x10] sm:$0xff] (%p1129_p4), %v231_v2  ;;  %234 = vst [vmem:[%s1153_s13 + $0x18] sm:$0xff] (%p1129_p4), %v233_v3 }
  0x17   : > { %236 = vst [vmem:[%s1153_s13 + $0x20] sm:$0xff] (%p1129_p4), %v235_v4  ;;  %238 = vst [vmem:[%s1153_s13 + $0x28] sm:$0xff] (%p1129_p4), %v237_v5  ;;  %v239_v6 = vld [vmem:[%s1145_s12 + $0x60] sm:$0xff] (%p1129_p4)  ;;  %v241_v7 = vld [vmem:[%s1145_s12 + $0x68] sm:$0xff] (%p1129_p4) }
  0x18   : > { %v243_v8 = vld [vmem:[%s1145_s12 + $0x80] sm:$0xff]  ;;  %240 = vst [vmem:[%s1153_s13 + $0x30] sm:$0xff] %v239_v6  ;;  %242 = vst [vmem:[%s1153_s13 + $0x38] sm:$0xff] %v241_v7  ;;  %v245_v9 = vld [vmem:[%s1145_s12 + $0x88] sm:$0xff] }
  0x19   : > { %244 = vst [vmem:[%s1153_s13 + $0x40] sm:$0xff] %v243_v8  ;;  %v247_v10 = vld [vmem:[%s1145_s12 + $0xa0] sm:$0xff]  ;;  %v249_v11 = vld [vmem:[%s1145_s12 + $0xa8] sm:$0xff]  ;;  %246 = vst [vmem:[%s1153_s13 + $0x48] sm:$0xff] %v245_v9 }
  0x1a   : > { %248 = vst [vmem:[%s1153_s13 + $0x50] sm:$0xff] %v247_v10  ;;  %250 = vst [vmem:[%s1153_s13 + $0x58] sm:$0xff] %v249_v11  ;;  %v251_v12 = vld [vmem:[%s1145_s12 + $0xc0] sm:$0xff]  ;;  %v253_v13 = vld [vmem:[%s1145_s12 + $0xc8] sm:$0xff] }
  0x1b   : > { %v255_v14 = vld [vmem:[%s1145_s12 + $0xe0] sm:$0xff]  ;;  %252 = vst [vmem:[%s1153_s13 + $0x60] sm:$0xff] %v251_v12  ;;  %254 = vst [vmem:[%s1153_s13 + $0x68] sm:$0xff] %v253_v13  ;;  %v257_v15 = vld [vmem:[%s1145_s12 + $0xe8] sm:$0xff] }
  0x1c   : > { %256 = vst [vmem:[%s1153_s13 + $0x70] sm:$0xff] %v255_v14  ;;  %v259_v16 = vld [vmem:[%s1145_s12 + $0x100] sm:$0xff]  ;;  %v261_v17 = vld [vmem:[%s1145_s12 + $0x108] sm:$0xff]  ;;  %258 = vst [vmem:[%s1153_s13 + $0x78] sm:$0xff] %v257_v15 }
  0x1d   : > { %260 = vst [vmem:[%s1153_s13 + $0x80] sm:$0xff] %v259_v16  ;;  %262 = vst [vmem:[%s1153_s13 + $0x88] sm:$0xff] %v261_v17  ;;  %v263_v18 = vld [vmem:[%s1145_s12 + $0x120] sm:$0xff]  ;;  %v265_v19 = vld [vmem:[%s1145_s12 + $0x128] sm:$0xff] }
  0x1e   : > { %v267_v20 = vld [vmem:[%s1145_s12 + $0x140] sm:$0xff]  ;;  %264 = vst [vmem:[%s1153_s13 + $0x90] sm:$0xff] %v263_v18  ;;  %266 = vst [vmem:[%s1153_s13 + $0x98] sm:$0xff] %v265_v19  ;;  %v269_v21 = vld [vmem:[%s1145_s12 + $0x148] sm:$0xff] }
  0x1f   : > { %268 = vst [vmem:[%s1153_s13 + $0xa0] sm:$0xff] %v267_v20  ;;  %v271_v22 = vld [vmem:[%s1145_s12 + $0x160] sm:$0xff]  ;;  %v273_v23 = vld [vmem:[%s1145_s12 + $0x168] sm:$0xff]  ;;  %270 = vst [vmem:[%s1153_s13 + $0xa8] sm:$0xff] %v269_v21 }
  0x20   : > { %272 = vst [vmem:[%s1153_s13 + $0xb0] sm:$0xff] %v271_v22  ;;  %274 = vst [vmem:[%s1153_s13 + $0xb8] sm:$0xff] %v273_v23  ;;  %v275_v24 = vld [vmem:[%s1145_s12 + $0x180] sm:$0xff]  ;;  %v277_v25 = vld [vmem:[%s1145_s12 + $0x188] sm:$0xff] }
  0x21   : > { %v279_v26 = vld [vmem:[%s1145_s12 + $0x1a0] sm:$0xff]  ;;  %276 = vst [vmem:[%s1153_s13 + $0xc0] sm:$0xff] %v275_v24  ;;  %278 = vst [vmem:[%s1153_s13 + $0xc8] sm:$0xff] %v277_v25  ;;  %v281_v27 = vld [vmem:[%s1145_s12 + $0x1a8] sm:$0xff] }
  0x22   : > { %280 = vst [vmem:[%s1153_s13 + $0xd0] sm:$0xff] %v279_v26  ;;  %282 = vst [vmem:[%s1153_s13 + $0xd8] sm:$0xff] %v281_v27 }
  0x23 PF: > { %288 = sbr.rel (!%p1129_p4) target bundleno = 43 (0x2b), region = 59  ;;  %s290_s14 = sand.u32 (%p1129_p4), 1, %s1057_s22  }
  0x24   : > { %s966_s15 = sshll.u32 (%p1129_p4), %s1061_s23, 5  ;;  %s917_s16 = sshll.u32 (%p1129_p4), %s290_s14, 6 }
  0x25   : > { %s295_s19 = scalar_lea.vmem (%p1129_p4), %s1302_s1, %s966_s15  ;;  %s292_s20 = scalar_lea.vmem (%p1129_p4), [#allocation3], %s917_s16 }
  0x26   : > { %v308_v28 = vld [vmem:[%s295_s19] sm:$0xff] (%p1129_p4)  ;;  %v310_v29 = vld [vmem:[%s295_s19 + $0x8] sm:$0xff] (%p1129_p4)  ;;  %v312_v30 = vld [vmem:[%s295_s19 + $0x10] sm:$0xff] (%p1129_p4) }
  0x27   : > { %309 = vst [vmem:[%s292_s20] sm:$0xff] (%p1129_p4), %v308_v28  ;;  %311 = vst [vmem:[%s292_s20 + $0x8] sm:$0xff] (%p1129_p4), %v310_v29  ;;  %v314_v31 = vld [vmem:[%s295_s19 + $0x18] sm:$0xff] (%p1129_p4)  ;;  %v316_v32 = vld [vmem:[%s295_s19 + $0x40] sm:$0xff] (%p1129_p4) }
  0x28   : > { %313 = vst [vmem:[%s292_s20 + $0x10] sm:$0xff] (%p1129_p4), %v312_v30  ;;  %v318_v33 = vld [vmem:[%s295_s19 + $0x48] sm:$0xff] (%p1129_p4)  ;;  %315 = vst [vmem:[%s292_s20 + $0x18] sm:$0xff] (%p1129_p4), %v314_v31  ;;  %v320_v34 = vld [vmem:[%s295_s19 + $0x50] sm:$0xff] (%p1129_p4) }
  0x29   : > { %317 = vst [vmem:[%s292_s20 + $0x20] sm:$0xff] (%p1129_p4), %v316_v32  ;;  %319 = vst [vmem:[%s292_s20 + $0x28] sm:$0xff] (%p1129_p4), %v318_v33  ;;  %v322_v35 = vld [vmem:[%s295_s19 + $0x58] sm:$0xff] (%p1129_p4) }
  0x2a   : > { %321 = vst [vmem:[%s292_s20 + $0x30] sm:$0xff] %v320_v34  ;;  %323 = vst [vmem:[%s292_s20 + $0x38] sm:$0xff] %v322_v35 }
  0x2b PF: > { %p920_p7 = scmp.ge.s32.totalorder %s1061_s23, 1  ;;  %p328_p8 = scmp.lt.s32.totalorder %s1061_s23, 3 }
  0x2d   : > { %p329_p9 = pnand %p920_p7, %p328_p8 }
  0x2e   : > { %s335_s26 = sand.u32 (!%p329_p9), 1, %s1053_s21   ;;  %v1063_v36 = vmov (!%p329_p9), 0   ;;  %v642_v37 = vld [vmem:[%s1304_s3] sm:$0xf] (!%p329_p9)  ;;  %vm547_vm0 = vcmask (!%p329_p9), 1045504   ;;  %vm543_vm1 = vcmask (!%p329_p9), 883712  }
  0x2f   : > { %332 = sbr.rel (%p329_p9) target bundleno = 532 (0x214), region = 82  ;;  %592 = vmatprep.mubr.bf16.mxu0 (!%p329_p9), %v1063_v36  ;;  %633 = vmatprep.mubr.bf16.mxu1 (!%p329_p9), %v1063_v36  ;;  %v652_v38 = vld [vmem:[%s1305_s4] sm:$0xf] (!%p329_p9)  ;;  %vm689_vm2 = vcmask (!%p329_p9), 1041408   ;;  %vm685_vm3 = vcmask (!%p329_p9), 31744   ;;  %s921_s15 = sshll.u32 (!%p329_p9), %s335_s26, 6 }
  0x30   : > { %s969_s27 = smul.u32 (!%p329_p9), 224, %s335_s26  ;;  %995 = vset.pattern.permute.xlu0 (!%p329_p9), %v1063_v36  ;;  %v378_v5 = vld [vmem:[%s1303_s2] sm:$0x3] (!%p329_p9)  ;;  %s344_s16 = scalar_lea.vmem (!%p329_p9), [#allocation3], %s921_s15 }
  0x31   : > { %645 = vperm.xlu0 (!%p329_p9), %995, %v642_v37   ;;  %v1038_v34 = vld [vmem:[%s1306_s5] sm:$0xff] (!%p329_p9)   ;;  %v673_v37 = vld [vmem:[%s344_s16 + $0x8] sm:$0xff] (!%p329_p9)  ;;  %s1266_s21 = scalar_lea.vmem (!%p329_p9), [#allocation4], %s921_s15 }
  0x32   : > { %s1226_s10 = scalar_lea.vmem (!%p329_p9), [#allocation2], %s969_s27  ;;  %v672_v35 = vld [vmem:[%s344_s16] sm:$0xff] (!%p329_p9) }
  0x33   : > { %v996_v39 = vld [vmem:[%s1226_s10 + $0x4] ss:$16 sps:$4 sm:$0xff] (!%p329_p9)   ;;  %v998_v40 = vld [vmem:[%s1226_s10 + $0xc] ss:$16 sps:$4 sm:$0xff] (!%p329_p9)   ;;  %v1000_v41 = vld [vmem:[%s1226_s10] ss:$16 sps:$4 sm:$0xff] (!%p329_p9)  }
  0x34   : > { %560 = vmatprep.subr.bf16.mxu0 (!%p329_p9), %v996_v39  ;;  %v1001_v42 = vld [vmem:[%s1226_s10 + $0x8] ss:$16 sps:$4 sm:$0xff] (!%p329_p9)   ;;  %601 = vmatprep.subr.bf16.mxu1 (!%p329_p9), %v998_v40  ;;  %v1002_v43 = vld [vmem:[%s1226_s10 + $0x24] ss:$16 sps:$4 sm:$0xff] (!%p329_p9)   ;;  %v1004_v44 = vld [vmem:[%s1226_s10 + $0x2c] ss:$16 sps:$4 sm:$0xff] (!%p329_p9)  }
  0x35   : > { %655 = vperm.xlu0 (!%p329_p9), %995, %v652_v38   ;;  %561 = vmatpush1.bf16.msra.mxu0 (!%p329_p9), %v1000_v41  ;;  %v1006_v45 = vld [vmem:[%s1226_s10 + $0x20] ss:$16 sps:$4 sm:$0xff] (!%p329_p9)   ;;  %v1007_v46 = vld [vmem:[%s1226_s10 + $0x28] ss:$16 sps:$4 sm:$0xff] (!%p329_p9)   ;;  %v1008_v47 = vld [vmem:[%s1226_s10 + $0x44] ss:$16 sps:$4 sm:$0xff] (!%p329_p9)  }
  0x36   : > { %602 = vmatpush1.bf16.msra.mxu1 %v1001_v42  ;;  %562 = vmatprep.subr.bf16.mxu0 %v1002_v43  ;;  %v1010_v48 = vld [vmem:[%s1226_s10 + $0x4c] ss:$16 sps:$4 sm:$0xff]   ;;  %v1012_v49 = vld [vmem:[%s1226_s10 + $0x40] ss:$16 sps:$4 sm:$0xff]   ;;  %v1013_v50 = vld [vmem:[%s1226_s10 + $0x48] ss:$16 sps:$4 sm:$0xff]  }
  0x37   : > { %603 = vmatprep.subr.bf16.mxu1 %v1004_v44  ;;  %v1014_v51 = vld [vmem:[%s1226_s10 + $0x64] ss:$16 sps:$4 sm:$0xff]   ;;  %v1016_v52 = vld [vmem:[%s1226_s10 + $0x6c] ss:$16 sps:$4 sm:$0xff]   ;;  %v1018_v53 = vld [vmem:[%s1226_s10 + $0x60] ss:$16 sps:$4 sm:$0xff]  }
  0x38   : > { %v1019_v54 = vld [vmem:[%s1226_s10 + $0x68] ss:$16 sps:$4 sm:$0xff]   ;;  %v1020_v55 = vld [vmem:[%s1226_s10 + $0x84] ss:$16 sps:$4 sm:$0xff]   ;;  %v1022_v56 = vld [vmem:[%s1226_s10 + $0x8c] ss:$16 sps:$4 sm:$0xff]  }
  0x39   : > { %563 = vmatpush1.bf16.msra.mxu0 %v1006_v45  ;;  %v1024_v57 = vld [vmem:[%s1226_s10 + $0x80] ss:$16 sps:$4 sm:$0xff]   ;;  %v1025_v58 = vld [vmem:[%s1226_s10 + $0x88] ss:$16 sps:$4 sm:$0xff]   ;;  %v1026_v59 = vld [vmem:[%s1226_s10 + $0xa4] ss:$16 sps:$4 sm:$0xff]  }
  0x3a   : > { %604 = vmatpush1.bf16.msra.mxu1 %v1007_v46  ;;  %564 = vmatprep.subr.bf16.mxu0 %v1008_v47  ;;  %v1028_v60 = vld [vmem:[%s1226_s10 + $0xac] ss:$16 sps:$4 sm:$0xff]   ;;  %v1030_v61 = vld [vmem:[%s1226_s10 + $0xa0] ss:$16 sps:$4 sm:$0xff]   ;;  %v1031_v62 = vld [vmem:[%s1226_s10 + $0xa8] ss:$16 sps:$4 sm:$0xff]  }
  0x3b   : > { %605 = vmatprep.subr.bf16.mxu1 %v1010_v48  ;;  %v1032_v63 = vld [vmem:[%s1226_s10 + $0xc4] ss:$16 sps:$4 sm:$0x3f]   ;;  %v1034_v0 = vld [vmem:[%s1226_s10 + $0xcc] ss:$16 sps:$4 sm:$0x3f]  }
  0x3c   : > { %v1036_v1 = vld [vmem:[%s1226_s10 + $0xc0] ss:$16 sps:$4 sm:$0x3f]   ;;  %v1037_v2 = vld [vmem:[%s1226_s10 + $0xc8] ss:$16 sps:$4 sm:$0x3f]  }
  0x3d   : > { %565 = vmatpush1.bf16.msra.mxu0 %v1012_v49  ;;  %v549_v3 = vsel %vm547_vm0, %v1036_v1, 0  ;;  %v555_v4 = vsel %vm547_vm0, %v1037_v2, 0  ;;  %v675_v38 = vld [vmem:[%s344_s16 + $0x18] sm:$0xff]  ;;  %v676_v41 = vld [vmem:[%s344_s16 + $0x20] sm:$0xff]  ;;  %v678_v42 = vld [vmem:[%s344_s16 + $0x30] sm:$0xff]  ;;  %s967_s17 = sshll.u32 (%p1133_p5), %s911_s24, 5 }
  0x3e   : > { %606 = vmatpush1.bf16.msra.mxu1 %v1013_v50  ;;  %566 = vmatprep.subr.bf16.mxu0 %v1014_v51  ;;  %v677_v47 = vld [vmem:[%s344_s16 + $0x28] sm:$0xff]  ;;  %v679_v48 = vld [vmem:[%s344_s16 + $0x38] sm:$0xff]  ;;  %s805_s20 = scalar_lea.vmem (%p1133_p5), %s1307_s6, %s967_s17 }
  0x3f   : > { %607 = vmatprep.subr.bf16.mxu1 %v1016_v52 }
  0x41   : > { %567 = vmatpush1.bf16.msra.mxu0 %v1018_v53 }
  0x42   : > { %608 = vmatpush1.bf16.msra.mxu1 %v1019_v54  ;;  %568 = vmatprep.subr.bf16.mxu0 %v1020_v55 }
  0x43   : > { %609 = vmatprep.subr.bf16.mxu1 %v1022_v56 }
  0x45   : > { %569 = vmatpush1.bf16.msra.mxu0 %v1024_v57 }
  0x46   : > { %610 = vmatpush1.bf16.msra.mxu1 %v1025_v58  ;;  %570 = vmatprep.subr.bf16.mxu0 %v1026_v59 }
  0x47   : > { %611 = vmatprep.subr.bf16.mxu1 %v1028_v60 }
  0x49   : > { %571 = vmatpush1.bf16.msra.mxu0 %v1030_v61 }
  0x4a   : > { %612 = vmatpush1.bf16.msra.mxu1 %v1031_v62  ;;  %951 = vmatprep.subr.msk.bf16.mxu0 %vm547_vm0, %v1032_v63 }
  0x4b   : > { %953 = vmatprep.subr.msk.bf16.mxu1 %vm547_vm0, %v1034_v0 }
  0x4d   : > { %573 = vmatpush1.bf16.msra.mxu0 %v549_v3 }
  0x4e   : > { %614 = vmatpush1.bf16.msra.mxu1 %v555_v4 }
  0x50   : > { %952 = vmatmul.mubr.msk.bf16.vlgmr.msra.gmra.mrb[0].mxu0 %vm543_vm1, %v378_v5 }
  0x51   : > { %954 = vmatmul.mubr.msk.bf16.vlgmr.msra.gmra.mrb[0].mxu1 %vm543_vm1, %v378_v5  ;;  %734 = vmatprep.mubr.bf16.mxu0 %v1063_v36 }
  0x52   : > { %777 = vmatprep.mubr.bf16.mxu1 %v1063_v36  ;;  %v674_v36 = vld [vmem:[%s344_s16 + $0x10] sm:$0xff] }
  0xb0   : > { %v646_v6 = vpop.permute.xlu0 %645 }
  0xb4   : > { %v656_v7 = vpop.permute.xlu0 %655 }
 0x123   : > { %v594_v8 = vpop.f32.mrb[0].mxu0 }
 0x124   : > { %v635_v9 = vpop.f32.mrb[0].mxu1  ;;  %v648_v10 = vmul.f32 %v646_v6, %v594_v8  ;;  %v596_v12 = vpop.f32.mrb[1].mxu0 }
 0x125   : > { %v650_v11 = vmul.f32 %v646_v6, %v635_v9  ;;  %v637_v13 = vpop.f32.mrb[1].mxu1  ;;  %v649_v14 = vmul.f32 %v646_v6, %v596_v12  ;;  %v598_v16 = vpop.f32.mrb[2].mxu0 }
 0x126   : > { %v651_v15 = vmul.f32 %v646_v6, %v637_v13  ;;  %v639_v17 = vpop.f32.mrb[2].mxu1  ;;  %v658_v18 = vadd.f32 %v656_v7, %v648_v10  ;;  %v599_v20 = vpop.f32.mrb[3].mxu0 }
 0x127   : > { %v660_v19 = vadd.f32 %v656_v7, %v650_v11  ;;  %v640_v21 = vpop.f32.mrb[3].mxu1  ;;  %v659_v22 = vadd.f32 %v656_v7, %v649_v14 }
 0x128   : > { %v661_v23 = vadd.f32 %v656_v7, %v651_v15  ;;  %v662_v24 = vmax.f32 %v658_v18, 0.0 }
 0x129   : > { %v664_v25 = vmax.f32 %v660_v19, 0.0  ;;  %v663_v26 = vmax.f32 %v659_v22, 0.0 }
 0x12a   : > { %v665_v27 = vmax.f32 %v661_v23, 0.0  ;;  %v668_v28 = vpack.c.bf16 %v662_v24, %v662_v24 }
 0x12b   : > { %v670_v29 = vpack.c.bf16 %v664_v25, %v664_v25  ;;  %v669_v30 = vpack.c.bf16 %v663_v26, %v663_v26 }
 0x12c   : > { %v671_v31 = vpack.c.bf16 %v665_v27, %v665_v27  ;;  %v691_v32 = vsel %vm689_vm2, %v668_v28, 0 }
 0x12d   : > { %v697_v33 = vsel %vm689_vm2, %v670_v29, 0  ;;  %956 = vmatprep.subr.msk.bf16.mxu0 %vm689_vm2, %v669_v30 }
 0x12e   : > { %958 = vmatprep.subr.msk.bf16.mxu1 %vm689_vm2, %v671_v31  ;;  %703 = vmatpush1.bf16.msra.mxu0 %v691_v32 }
 0x12f   : > { %746 = vmatpush1.bf16.msra.mxu1 %v697_v33 }
 0x131   : > { %957 = vmatmul.mubr.msk.bf16.vlgmr.msra.gmra.mrb[4].mxu0 %vm685_vm3, %v1038_v34 }
 0x132   : > { %959 = vmatmul.mubr.msk.bf16.vlgmr.msra.gmra.mrb[4].mxu1 %vm685_vm3, %v1038_v34 }
 0x204   : > { %v736_v39 = vpop.f32.mrb[4].mxu0 }
 0x205   : > { %v779_v40 = vpop.f32.mrb[4].mxu1  ;;  %v737_v43 = vadd.f32 %v736_v39, %v672_v35  ;;  %v738_v45 = vpop.f32.mrb[5].mxu0  ;;  %802 = sbr.rel (!%p1133_p5) target bundleno = 532 (0x214), region = 94 }
 0x206   : > { %v780_v44 = vadd.f32 %v779_v40, %v674_v36  ;;  %v781_v46 = vpop.f32.mrb[5].mxu1  ;;  %v739_v49 = vadd.f32 %v738_v45, %v673_v37  ;;  %v740_v51 = vpop.f32.mrb[6].mxu0 }
 0x207   : > { %v782_v50 = vadd.f32 %v781_v46, %v675_v38  ;;  %v783_v52 = vpop.f32.mrb[6].mxu1  ;;  %788 = vst [vmem:[%s1266_s21] sm:$0xff] %v737_v43  ;;  %v741_v53 = vadd.f32 %v740_v51, %v676_v41  ;;  %v742_v55 = vpop.f32.mrb[7].mxu0 }
 0x208   : > { %790 = vst [vmem:[%s1266_s21 + $0x10] sm:$0xff] %v780_v44  ;;  %v784_v54 = vadd.f32 %v783_v52, %v678_v42  ;;  %v785_v56 = vpop.f32.mrb[7].mxu1  ;;  %789 = vst [vmem:[%s1266_s21 + $0x8] sm:$0xff] %v739_v49  ;;  %v743_v57 = vadd.f32 %v742_v55, %v677_v47 }
 0x209   : > { %791 = vst [vmem:[%s1266_s21 + $0x18] sm:$0xff] %v782_v50  ;;  %v786_v58 = vadd.f32 %v785_v56, %v679_v48  ;;  %792 = vst [vmem:[%s1266_s21 + $0x20] sm:$0xff] %v741_v53 }
 0x20a   : > { %794 = vst [vmem:[%s1266_s21 + $0x30] sm:$0xff] %v784_v54  ;;  %793 = vst [vmem:[%s1266_s21 + $0x28] sm:$0xff] %v743_v57 }
 0x20b   : > { %795 = vst [vmem:[%s1266_s21 + $0x38] sm:$0xff] %v786_v58 }
 0x20e   : > { %v818_v59 = vld [vmem:[%s1266_s21] sm:$0xff] }
 0x20f   : > { %v820_v60 = vld [vmem:[%s1266_s21 + $0x8] sm:$0xff]  ;;  %v822_v61 = vld [vmem:[%s1266_s21 + $0x10] sm:$0xff]  ;;  %819 = vst [vmem:[%s805_s20] sm:$0xff] %v818_v59 }
 0x210   : > { %v824_v62 = vld [vmem:[%s1266_s21 + $0x18] sm:$0xff]  ;;  %v826_v63 = vld [vmem:[%s1266_s21 + $0x20] sm:$0xff]  ;;  %821 = vst [vmem:[%s805_s20 + $0x8] sm:$0xff] %v820_v60  ;;  %823 = vst [vmem:[%s805_s20 + $0x10] sm:$0xff] %v822_v61 }
 0x211   : > { %v828_v0 = vld [vmem:[%s1266_s21 + $0x28] sm:$0xff]  ;;  %825 = vst [vmem:[%s805_s20 + $0x18] sm:$0xff] %v824_v62  ;;  %827 = vst [vmem:[%s805_s20 + $0x40] sm:$0xff] %v826_v63  ;;  %v830_v1 = vld [vmem:[%s1266_s21 + $0x30] sm:$0xff] }
 0x212   : > { %829 = vst [vmem:[%s805_s20 + $0x48] sm:$0xff] %v828_v0  ;;  %v832_v2 = vld [vmem:[%s1266_s21 + $0x38] sm:$0xff]  ;;  %831 = vst [vmem:[%s805_s20 + $0x50] sm:$0xff] %v830_v1 }
 0x213   : > { %833 = vst [vmem:[%s805_s20 + $0x58] sm:$0xff] %v832_v2 }
 0x214 PF: > { %p13_p10 = scmp.ge.s32.totalorder %s1116_s25, 4   ;;  %s1310_s21 = smov %s1057_s22 }
 0x215   : > { %s1311_s22 = smov %s1127_s28  ;;  %s1312_s23 = smov %s1116_s25 }
 0x216   :  { %15 = sbr.rel (!%p13_p10) target bundleno = 2 (0x2), region = 156 }

// kernel: fish_tail_forward.9
= control target key start
LH: loop header
LB: loop body
LE: loop exit
PB: predicated region body
PF: predicated region fallthrough
CT: control target
= control target key end

     0   :  { %s108_s0 = inlined_call_operand.vmem [shape: f32[8,16,128], index: 0, kind: input, shape index: {}]   ;;  %s109_s1 = inlined_call_operand.vmem [shape: f32[16,128], index: 1, kind: output, shape index: {}]  }
   0x1   :  { %v8_v0 = vld [vmem:[%s108_s0] sm:$0xff]  ;;  %v10_v1 = vld [vmem:[%s108_s0 + $0x10] sm:$0xff]  ;;  %v9_v5 = vld [vmem:[%s108_s0 + $0x8] sm:$0xff] }
   0x2   :  { %v12_v2 = vld [vmem:[%s108_s0 + $0x20] sm:$0xff]  ;;  %v24_v3 = vmax.f32 %v8_v0, %v10_v1  ;;  %v14_v4 = vld [vmem:[%s108_s0 + $0x30] sm:$0xff]  ;;  %v11_v7 = vld [vmem:[%s108_s0 + $0x18] sm:$0xff] }
   0x3   :  { %v13_v8 = vld [vmem:[%s108_s0 + $0x28] sm:$0xff]  ;;  %v16_v9 = vld [vmem:[%s108_s0 + $0x40] sm:$0xff]  ;;  %v25_v10 = vmax.f32 %v9_v5, %v11_v7  ;;  %v15_v12 = vld [vmem:[%s108_s0 + $0x38] sm:$0xff] }
   0x4   :  { %v26_v6 = vmax.f32 %v24_v3, %v12_v2  ;;  %v18_v13 = vld [vmem:[%s108_s0 + $0x50] sm:$0xff]  ;;  %v17_v16 = vld [vmem:[%s108_s0 + $0x48] sm:$0xff]  ;;  %v20_v17 = vld [vmem:[%s108_s0 + $0x60] sm:$0xff] }
   0x5   :  { %v27_v14 = vmax.f32 %v25_v10, %v13_v8  ;;  %v19_v20 = vld [vmem:[%s108_s0 + $0x58] sm:$0xff]  ;;  %v22_v21 = vld [vmem:[%s108_s0 + $0x70] sm:$0xff]  ;;  %v21_v24 = vld [vmem:[%s108_s0 + $0x68] sm:$0xff] }
   0x6   :  { %v28_v11 = vmax.f32 %v26_v6, %v14_v4  ;;  %v23_v27 = vld [vmem:[%s108_s0 + $0x78] sm:$0xff] }
   0x7   :  { %v29_v18 = vmax.f32 %v27_v14, %v15_v12 }
   0x8   :  { %v30_v15 = vmax.f32 %v28_v11, %v16_v9 }
   0x9   :  { %v31_v22 = vmax.f32 %v29_v18, %v17_v16 }
   0xa   :  { %v32_v19 = vmax.f32 %v30_v15, %v18_v13 }
   0xb   :  { %v33_v25 = vmax.f32 %v31_v22, %v19_v20 }
   0xc   :  { %v34_v23 = vmax.f32 %v32_v19, %v20_v17 }
   0xd   :  { %v35_v28 = vmax.f32 %v33_v25, %v21_v24 }
   0xe   :  { %v36_v26 = vmax.f32 %v34_v23, %v22_v21 }
   0xf   :  { %v37_v29 = vmax.f32 %v35_v28, %v23_v27 }
  0x10   :  { %38 = vst [vmem:[%s109_s1] sm:$0xff] %v36_v26 }
  0x11   :  { %39 = vst [vmem:[%s109_s1 + $0x8] sm:$0xff] %v37_v29 }

</bundles_post_ra>
